<compile_context>
chip_gen: v6e
topology: v6e:2x2x1
jax: 0.10.0
libtpu: 0.0.40
codegen_flags: <defaults>
</compile_context>

<pallas_src>
import functools
import math

import jax
import jax.numpy as jnp
from jax.experimental import pallas as pl
from jax.experimental.pallas import tpu as pltpu


# ----------------------------- config ---------------------------------------
CFG = dict(
    vocab_size=256,
    context_length=8,
    emb_dim=64,
    n_heads=4,
    n_layers=2,
    drop_rate=0.0,   # dropout is identity in eval mode
    qkv_bias=False,
)
HEAD_DIM = CFG["emb_dim"] // CFG["n_heads"]
EPS = 1e-5
GELU_C = math.sqrt(2.0 / math.pi)


# ----------------------------- kernel helpers --------------------------------
def _layernorm(v, scale, shift):
    # mean / biased var over last axis (matches torch var(unbiased=False));
    # rsqrt goes to the EUP instead of a VALU divide + sqrt.
    mean = jnp.mean(v, axis=-1, keepdims=True)
    c = v - mean
    var = jnp.mean(c * c, axis=-1, keepdims=True)
    return scale * (c * jax.lax.rsqrt(var + EPS)) + shift


def _gelu(v):
    # Reproduces the (non-standard) GELU in the reference exactly:
    #   0.5 * x * tanh(sqrt(2/pi) * (x + 0.044715 x^3))
    t = v + 0.044715 * (v * v * v)
    return 0.5 * v * jnp.tanh(GELU_C * t)


# ----------------------------- fused GPT kernel -------------------------------
def gpt_fused_kernel(
    x_ref,                                   # (B*T, D)  token+pos embeddings
    wqkv_ref,                                # (1, D, 3D)  fused QKV weights
    wp_ref, bp_ref,                          # (1, D, D), (1, 1, D)
    ln1s_ref, ln1b_ref,                      # (1, 1, D)
    ln2s_ref, ln2b_ref,                      # (1, 1, D)
    w1_ref, b1_ref,                          # (1, D, 4D), (1, 1, 4D)
    w2_ref, b2_ref,                          # (1, 4D, D), (1, 1, D)
    lnfs_ref, lnfb_ref,                      # (1, D)  final LayerNorm
    wout_ref,                                # (D, V)  output head
    o_ref,                                   # (B*T, V) logits
    x_sc,                                    # VMEM (B*T, D)  resident activation
    *, batch, seq_len, num_heads, head_dim,
):
    l = pl.program_id(0)
    D = num_heads * head_dim
    BT = batch * seq_len

    # Layer 0: load embeddings into the resident activation buffer.
    @pl.when(l == 0)
    def _():
        x_sc[...] = x_ref[...]

    x = x_sc[...]                                        # (B*T, D)

    # --- attention sublayer ---------------------------------------------------
    xn = _layernorm(x, ln1s_ref[0], ln1b_ref[0])
    qkv = jnp.dot(xn, wqkv_ref[0],
                  preferred_element_type=jnp.float32)    # (B*T, 3D) one MXU pass
    wp = wp_ref[0]                                       # (D, D)

    # causal mask (col > row), broadcast over batch
    row = jax.lax.broadcasted_iota(jnp.int32, (1, seq_len, seq_len), 1)
    col = jax.lax.broadcasted_iota(jnp.int32, (1, seq_len, seq_len), 2)
    causal = col > row
    inv_sqrt_hd = 1.0 / math.sqrt(head_dim)
    neg_big = jnp.float32(-1e30)   # finite stand-in for -inf (same softmax result)

    # Per-head attention (static unroll, batched over B). Each head's context
    # is folded straight into the output projection via the matching sublane
    # rows of Wp — no cross-lane concat, no masked lane-slice stores.
    attn_acc = jnp.zeros((BT, D), jnp.float32)
    for h in range(num_heads):
        lo = h * head_dim
        qh = qkv[:, lo:lo + head_dim].reshape(batch, seq_len, head_dim)
        kh = qkv[:, D + lo:D + lo + head_dim].reshape(batch, seq_len, head_dim)
        vh = qkv[:, 2 * D + lo:2 * D + lo + head_dim].reshape(batch, seq_len, head_dim)

        s = jnp.einsum("bqd,bkd->bqk", qh, kh,
                       preferred_element_type=jnp.float32)          # (B, T, T)
        s = jnp.where(causal, neg_big, s) * inv_sqrt_hd
        s = s - jnp.max(s, axis=-1, keepdims=True)
        e = jnp.exp(s)
        p = e * pl.reciprocal(jnp.sum(e, axis=-1, keepdims=True), approx=True)
        ch = jnp.einsum("bqk,bkd->bqd", p, vh,
                        preferred_element_type=jnp.float32)          # (B, T, hd)
        attn_acc = attn_acc + jnp.dot(
            ch.reshape(BT, head_dim), wp[lo:lo + head_dim, :],
            preferred_element_type=jnp.float32)                      # (B*T, D)

    x1 = x + attn_acc + bp_ref[0]             # dropout = identity (eval)

    # --- feed-forward sublayer -------------------------------------------------
    xn2 = _layernorm(x1, ln2s_ref[0], ln2b_ref[0])
    h1 = jnp.dot(xn2, w1_ref[0], preferred_element_type=jnp.float32) + b1_ref[0]
    h1 = _gelu(h1)
    ffn = jnp.dot(h1, w2_ref[0], preferred_element_type=jnp.float32) + b2_ref[0]
    x2 = x1 + ffn

    x_sc[...] = x2                            # carry activation to next layer

    # --- final LayerNorm + output head on the last layer step -------------------
    @pl.when(l == pl.num_programs(0) - 1)
    def _():
        xf = _layernorm(x2, lnfs_ref[...], lnfb_ref[...])
        o_ref[...] = jnp.dot(xf, wout_ref[...], preferred_element_type=jnp.float32)


# ----------------------------- pallas wrapper ---------------------------------
def _per_layer_spec(shape):
    nd = len(shape)
    return pl.BlockSpec((1,) + tuple(shape[1:]),
                        lambda l, _nd=nd: (l,) + (0,) * (_nd - 1))


def _resident_spec(shape):
    nd = len(shape)
    return pl.BlockSpec(tuple(shape), lambda l, _nd=nd: (0,) * _nd)


def gpt_forward(token_ids, params):
    B, T = token_ids.shape
    D, V, L, H = CFG["emb_dim"], CFG["vocab_size"], CFG["n_layers"], CFG["n_heads"]
    H4 = 4 * D
    BT = B * T

    # embedding gather + positional add (plain-JAX glue; gather has no clean
    # rectangular BlockSpec expression at this size)
    x = jnp.take(params["tok_emb"], token_ids, axis=0) + params["pos_emb"][:T]
    x = x.reshape(BT, D).astype(jnp.float32)
    # drop_emb = identity (eval)

    layer_weights = [params["wqkv"], params["wp"], params["bp"],
                     params["ln1s"], params["ln1b"],
                     params["ln2s"], params["ln2b"],
                     params["w1"], params["b1"], params["w2"], params["b2"]]
    final_weights = [params["lnfs"], params["lnfb"], params["wout"]]

    kernel = functools.partial(gpt_fused_kernel, batch=B, seq_len=T,
                               num_heads=H, head_dim=HEAD_DIM)

    # advisory cost hint for XLA
    flops = int(L * (2 * BT * D * 3 * D              # fused QKV
                     + 4 * B * H * T * T * HEAD_DIM  # scores + context
                     + 2 * BT * D * D                # output projection
                     + 4 * BT * D * H4)              # FFN (two matmuls)
                + 2 * BT * D * V)                    # output head
    transcendentals = int(L * (B * H * T * T + BT * H4 + 3 * BT))
    bytes_accessed = int(4 * (x.size + BT * V
                              + sum(int(w.size) for w in layer_weights)
                              + sum(int(w.size) for w in final_weights)))

    out = pl.pallas_call(
        kernel,
        out_shape=jax.ShapeDtypeStruct((BT, V), jnp.float32),
        grid_spec=pltpu.PrefetchScalarGridSpec(
            num_scalar_prefetch=0,
            grid=(L,),
            in_specs=([_resident_spec(x.shape)]
                      + [_per_layer_spec(w.shape) for w in layer_weights]
                      + [_resident_spec(w.shape) for w in final_weights]),
            out_specs=_resident_spec((BT, V)),
            scratch_shapes=[pltpu.VMEM((BT, D), jnp.float32)],   # resident activation
        ),
        compiler_params=pltpu.CompilerParams(
            dimension_semantics=("arbitrary",)),
        cost_estimate=pl.CostEstimate(flops=flops,
                                      transcendentals=transcendentals,
                                      bytes_accessed=bytes_accessed),
    )(x, *layer_weights, *final_weights)

    return out.reshape(B, T, V)


# ----------------------------- pure-JAX reference ------------------------------
def gpt_reference(token_ids, params):
    hp = "highest"
    B, T = token_ids.shape
    D, H, hd, L = CFG["emb_dim"], CFG["n_heads"], HEAD_DIM, CFG["n_layers"]

    def ln(v, s, b):
        mean = jnp.mean(v, axis=-1, keepdims=True)
        var = jnp.mean((v - mean) ** 2, axis=-1, keepdims=True)
        return s * ((v - mean) / jnp.sqrt(var + EPS)) + b

    def gelu(v):
        t = v + 0.044715 * v ** 3
        return 0.5 * v * jnp.tanh(jnp.sqrt(2.0 / jnp.pi) * t)

    x = jnp.take(params["tok_emb"], token_ids, axis=0) + params["pos_emb"][:T]
    for l in range(L):
        wqkv = params["wqkv"][l]
        wq, wk, wv = wqkv[:, :D], wqkv[:, D:2 * D], wqkv[:, 2 * D:]
        xn = ln(x, params["ln1s"][l], params["ln1b"][l])
        q = jnp.einsum("btd,de->bte", xn, wq, precision=hp)
        k = jnp.einsum("btd,de->bte", xn, wk, precision=hp)
        v = jnp.einsum("btd,de->bte", xn, wv, precision=hp)
        q = q.reshape(B, T, H, hd).transpose(0, 2, 1, 3)
        k = k.reshape(B, T, H, hd).transpose(0, 2, 1, 3)
        v = v.reshape(B, T, H, hd).transpose(0, 2, 1, 3)
        s = jnp.einsum("bhqd,bhkd->bhqk", q, k, precision=hp)
        mask = jnp.triu(jnp.ones((T, T), dtype=bool), k=1)
        s = jnp.where(mask, -jnp.inf, s) / jnp.sqrt(jnp.float32(hd))
        w = jax.nn.softmax(s, axis=-1)
        ctx = jnp.einsum("bhqk,bhkd->bhqd", w, v, precision=hp)
        ctx = ctx.transpose(0, 2, 1, 3).reshape(B, T, D)
        attn = (jnp.einsum("btd,de->bte", ctx, params["wp"][l], precision=hp)
                + params["bp"][l])
        x = x + attn
        xn2 = ln(x, params["ln2s"][l], params["ln2b"][l])
        h1 = gelu(jnp.einsum("btd,df->btf", xn2, params["w1"][l], precision=hp)
                  + params["b1"][l])
        x = (x + jnp.einsum("btf,fd->btd", h1, params["w2"][l], precision=hp)
             + params["b2"][l])
    xn = ln(x, params["lnfs"], params["lnfb"])
    return jnp.einsum("btd,dv->btv", xn, params["wout"], precision=hp)


# ----------------------------- deterministic params ----------------------------
def init_params(key):
    D, V, C, L = CFG["emb_dim"], CFG["vocab_size"], CFG["context_length"], CFG["n_layers"]
    H4 = 4 * D
    keys = iter(jax.random.split(key, 32))

    def nrm(shape, std=0.02):
        return (std * jax.random.normal(next(keys), shape)).astype(jnp.float32)

    return {
        "tok_emb": nrm((V, D)),
        "pos_emb": nrm((C, D)),
        # per-layer weights stacked on a leading layer axis (fused-kernel layout)
        "wqkv": nrm((L, D, 3 * D)),
        "wp":   nrm((L, D, D)),
        "bp":   nrm((L, 1, D)),
        "ln1s": 1.0 + nrm((L, 1, D)),
        "ln1b": nrm((L, 1, D)),
        "ln2s": 1.0 + nrm((L, 1, D)),
        "ln2b": nrm((L, 1, D)),
        "w1":   nrm((L, D, H4)),
        "b1":   nrm((L, 1, H4)),
        "w2":   nrm((L, H4, D)),
        "b2":   nrm((L, 1, D)),
        "lnfs": 1.0 + nrm((1, D)),
        "lnfb": nrm((1, D)),
        "wout": nrm((D, V)),
    }


# ----------------------------- main --------------------------------------------
if __name__ == "__main__":
    key = jax.random.PRNGKey(0)
    k_param, k_tok = jax.random.split(key)
    params = init_params(k_param)

    B, T = 2, CFG["context_length"]
    token_ids = jax.random.randint(k_tok, (B, T), 0, CFG["vocab_size"], dtype=jnp.int32)

    logits = jax.block_until_ready(gpt_forward(token_ids, params))
    ref = gpt_reference(token_ids, params)

    assert logits.shape == (B, T, CFG["vocab_size"])
    max_err = jnp.max(jnp.abs(logits - ref))
    assert jnp.allclose(logits, ref, atol=5e-3, rtol=5e-3), f"max abs err {max_err}"

    print("KERNEL_OK")
</pallas_src>

<mosaic_0001>
module attributes {stable_mosaic.version = 11 : i64} {
  func.func @gpt_fused_kernel(%arg0: i32, %arg1: memref<16x64xf32, #tpu.memory_space<vmem>>, %arg2: memref<1x64x192xf32, #tpu.memory_space<vmem>>, %arg3: memref<1x64x64xf32, #tpu.memory_space<vmem>>, %arg4: memref<1x1x64xf32, #tpu.memory_space<vmem>>, %arg5: memref<1x1x64xf32, #tpu.memory_space<vmem>>, %arg6: memref<1x1x64xf32, #tpu.memory_space<vmem>>, %arg7: memref<1x1x64xf32, #tpu.memory_space<vmem>>, %arg8: memref<1x1x64xf32, #tpu.memory_space<vmem>>, %arg9: memref<1x64x256xf32, #tpu.memory_space<vmem>>, %arg10: memref<1x1x256xf32, #tpu.memory_space<vmem>>, %arg11: memref<1x256x64xf32, #tpu.memory_space<vmem>>, %arg12: memref<1x1x64xf32, #tpu.memory_space<vmem>>, %arg13: memref<1x64xf32, #tpu.memory_space<vmem>>, %arg14: memref<1x64xf32, #tpu.memory_space<vmem>>, %arg15: memref<64x256xf32, #tpu.memory_space<vmem>>, %arg16: memref<16x256xf32, #tpu.memory_space<vmem>>, %arg17: memref<16x64xf32, #tpu.memory_space<vmem>>) attributes {dimension_semantics = [#tpu.dimension_semantics<arbitrary>], iteration_bounds = array<i64: 2>, scalar_prefetch = 0 : i64, scratch_operands = 1 : i64, tpu.core_type = #tpu.core_type<tc>, window_params = [{pipeline_mode = #tpu.pipeline_mode<synchronous>, transform_indices = @transform_0, window_bounds = array<i64: 16, 64>}, {transform_indices = @transform_1, window_bounds = array<i64: 1, 64, 192>}, {transform_indices = @transform_2, window_bounds = array<i64: 1, 64, 64>}, {transform_indices = @transform_3, window_bounds = array<i64: 1, 1, 64>}, {transform_indices = @transform_4, window_bounds = array<i64: 1, 1, 64>}, {transform_indices = @transform_5, window_bounds = array<i64: 1, 1, 64>}, {transform_indices = @transform_6, window_bounds = array<i64: 1, 1, 64>}, {transform_indices = @transform_7, window_bounds = array<i64: 1, 1, 64>}, {transform_indices = @transform_8, window_bounds = array<i64: 1, 64, 256>}, {transform_indices = @transform_9, window_bounds = array<i64: 1, 1, 256>}, {transform_indices = @transform_10, window_bounds = array<i64: 1, 256, 64>}, {transform_indices = @transform_11, window_bounds = array<i64: 1, 1, 64>}, {pipeline_mode = #tpu.pipeline_mode<synchronous>, transform_indices = @transform_12, window_bounds = array<i64: 1, 64>}, {pipeline_mode = #tpu.pipeline_mode<synchronous>, transform_indices = @transform_13, window_bounds = array<i64: 1, 64>}, {pipeline_mode = #tpu.pipeline_mode<synchronous>, transform_indices = @transform_14, window_bounds = array<i64: 64, 256>}, {pipeline_mode = #tpu.pipeline_mode<synchronous>, transform_indices = @transform_15, window_bounds = array<i64: 16, 256>}]} {
    %c0_i32 = arith.constant 0 : i32
    %0 = arith.cmpi eq, %arg0, %c0_i32 : i32
    %1 = arith.extui %0 : i1 to i32
    %c0_i32_0 = arith.constant 0 : i32
    %2 = arith.cmpi ne, %1, %c0_i32_0 : i32
    scf.if %2 {
      %c0_82 = arith.constant 0 : index
      %c0_83 = arith.constant 0 : index
      %208 = vector.load %arg1[%c0_82, %c0_83] : memref<16x64xf32, #tpu.memory_space<vmem>>, vector<16x64xf32>
      %c0_84 = arith.constant 0 : index
      %c0_85 = arith.constant 0 : index
      %209 = vector.load %arg17[%c0_84, %c0_85] : memref<16x64xf32, #tpu.memory_space<vmem>>, vector<16x64xf32>
      tpu.vector_store %arg17[%c0_84, %c0_85], %208 {strides = array<i32>} : memref<16x64xf32, #tpu.memory_space<vmem>>, vector<16x64xf32>,
    } else {
    }
    %c0 = arith.constant 0 : index
    %c0_1 = arith.constant 0 : index
    %3 = vector.load %arg17[%c0, %c0_1] : memref<16x64xf32, #tpu.memory_space<vmem>>, vector<16x64xf32>
    %c0_2 = arith.constant 0 : index
    %c0_3 = arith.constant 0 : index
    %c0_4 = arith.constant 0 : index
    %4 = vector.load %arg5[%c0_2, %c0_3, %c0_4] : memref<1x1x64xf32, #tpu.memory_space<vmem>>, vector<1x1x64xf32>
    %5 = vector.shape_cast %4 : vector<1x1x64xf32> to vector<1x64xf32>
    %c0_5 = arith.constant 0 : index
    %c0_6 = arith.constant 0 : index
    %c0_7 = arith.constant 0 : index
    %6 = vector.load %arg6[%c0_5, %c0_6, %c0_7] : memref<1x1x64xf32, #tpu.memory_space<vmem>>, vector<1x1x64xf32>
    %7 = vector.shape_cast %6 : vector<1x1x64xf32> to vector<1x64xf32>
    %cst = arith.constant dense<0.000000e+00> : vector<16xf32>
    %8 = vector.multi_reduction <add>, %3, %cst [1] : vector<16x64xf32> to vector<16xf32>
    %9 = vector.shape_cast %8 : vector<16xf32> to vector<16x1xf32>
    %cst_8 = arith.constant 6.400000e+01 : f32
    %10 = vector.broadcast %cst_8 : f32 to vector<16x1xf32>
    %11 = arith.divf %9, %10 : vector<16x1xf32>
    %12 = vector.broadcast %11 : vector<16x1xf32> to vector<16x64xf32>
    %13 = arith.subf %3, %12 : vector<16x64xf32>
    %14 = arith.mulf %13, %13 : vector<16x64xf32>
    %cst_9 = arith.constant dense<0.000000e+00> : vector<16xf32>
    %15 = vector.multi_reduction <add>, %14, %cst_9 [1] : vector<16x64xf32> to vector<16xf32>
    %16 = vector.shape_cast %15 : vector<16xf32> to vector<16x1xf32>
    %cst_10 = arith.constant 6.400000e+01 : f32
    %17 = vector.broadcast %cst_10 : f32 to vector<16x1xf32>
    %18 = arith.divf %16, %17 : vector<16x1xf32>
    %cst_11 = arith.constant 9.99999974E-6 : f32
    %19 = vector.broadcast %cst_11 : f32 to vector<16x1xf32>
    %20 = arith.addf %18, %19 : vector<16x1xf32>
    %21 = math.rsqrt %20 : vector<16x1xf32>
    %22 = vector.broadcast %21 : vector<16x1xf32> to vector<16x64xf32>
    %23 = arith.mulf %13, %22 : vector<16x64xf32>
    %24 = vector.broadcast %5 : vector<1x64xf32> to vector<16x64xf32>
    %25 = arith.mulf %24, %23 : vector<16x64xf32>
    %26 = vector.broadcast %7 : vector<1x64xf32> to vector<16x64xf32>
    %27 = arith.addf %25, %26 : vector<16x64xf32>
    %c0_12 = arith.constant 0 : index
    %c0_13 = arith.constant 0 : index
    %c0_14 = arith.constant 0 : index
    %28 = vector.load %arg2[%c0_12, %c0_13, %c0_14] : memref<1x64x192xf32, #tpu.memory_space<vmem>>, vector<1x64x192xf32>
    %29 = vector.shape_cast %28 : vector<1x64x192xf32> to vector<64x192xf32>
    %cst_15 = arith.constant dense<0.000000e+00> : vector<16x192xf32>
    %30 = tpu.matmul %27, %29, %cst_15 {dimension_numbers = #tpu.dot_dimension_numbers<[1], [0], [0], [1], [0, 0, 1, 1], [], []>} : vector<16x64xf32>, vector<64x192xf32>, vector<16x192xf32> -> vector<16x192xf32>
    %c0_16 = arith.constant 0 : index
    %c0_17 = arith.constant 0 : index
    %c0_18 = arith.constant 0 : index
    %31 = vector.load %arg3[%c0_16, %c0_17, %c0_18] : memref<1x64x64xf32, #tpu.memory_space<vmem>>, vector<1x64x64xf32>
    %32 = vector.shape_cast %31 : vector<1x64x64xf32> to vector<64x64xf32>
    %33 = tpu.iota {dimensions = array<i32: 1>} : vector<1x8x8xi32>
    %34 = tpu.iota {dimensions = array<i32: 2>} : vector<1x8x8xi32>
    %35 = arith.cmpi sgt, %34, %33 : vector<1x8x8xi32>
    %cst_19 = arith.constant 0.000000e+00 : f32
    %36 = vector.broadcast %cst_19 : f32 to vector<16x64xf32>
    %37 = vector.extract_strided_slice %30 {offsets = [0, 0], sizes = [16, 16], strides = [1, 1]} : vector<16x192xf32> to vector<16x16xf32>
    %38 = vector.shape_cast %37 : vector<16x16xf32> to vector<2x8x16xf32>
    %39 = vector.extract_strided_slice %30 {offsets = [0, 64], sizes = [16, 16], strides = [1, 1]} : vector<16x192xf32> to vector<16x16xf32>
    %40 = vector.shape_cast %39 : vector<16x16xf32> to vector<2x8x16xf32>
    %41 = vector.extract_strided_slice %30 {offsets = [0, 128], sizes = [16, 16], strides = [1, 1]} : vector<16x192xf32> to vector<16x16xf32>
    %42 = vector.shape_cast %41 : vector<16x16xf32> to vector<2x8x16xf32>
    "tpu.trace_start"() <{level = 10 : i32, message = "bqd,bkd->bqk"}> : () -> ()
    %cst_20 = arith.constant dense<0.000000e+00> : vector<2x8x8xf32>
    %43 = tpu.matmul %38, %40, %cst_20 {dimension_numbers = #tpu.dot_dimension_numbers<[2], [2], [1], [1], [0, 0, 0, 1, 1, 1], [0], [0]>} : vector<2x8x16xf32>, vector<2x8x16xf32>, vector<2x8x8xf32> -> vector<2x8x8xf32>
    %cst_21 = arith.constant -1.000000e+30 : f32
    "tpu.trace_stop"() : () -> ()
    %44 = vector.shape_cast %35 : vector<1x8x8xi1> to vector<1x8x8xi1>
    %45 = vector.broadcast %44 : vector<1x8x8xi1> to vector<2x8x8xi1>
    %46 = vector.broadcast %cst_21 : f32 to vector<2x8x8xf32>
    %47 = arith.select %45, %46, %43 : vector<2x8x8xi1>, vector<2x8x8xf32>
    %cst_22 = arith.constant 2.500000e-01 : f32
    %48 = vector.broadcast %cst_22 : f32 to vector<2x8x8xf32>
    %49 = arith.mulf %47, %48 : vector<2x8x8xf32>
    %cst_23 = arith.constant dense<0xFF800000> : vector<2x8xf32>
    %50 = vector.multi_reduction <maximumf>, %49, %cst_23 [2] : vector<2x8x8xf32> to vector<2x8xf32>
    %51 = vector.shape_cast %50 : vector<2x8xf32> to vector<2x8x1xf32>
    %52 = vector.broadcast %51 : vector<2x8x1xf32> to vector<2x8x8xf32>
    %53 = arith.subf %49, %52 : vector<2x8x8xf32>
    %54 = math.exp %53 : vector<2x8x8xf32>
    %cst_24 = arith.constant dense<0.000000e+00> : vector<2x8xf32>
    %55 = vector.multi_reduction <add>, %54, %cst_24 [2] : vector<2x8x8xf32> to vector<2x8xf32>
    %56 = vector.shape_cast %55 : vector<2x8xf32> to vector<2x8x1xf32>
    %57 = tpu.reciprocal %56 {approx = true} : vector<2x8x1xf32> -> vector<2x8x1xf32>
    %58 = vector.broadcast %57 : vector<2x8x1xf32> to vector<2x8x8xf32>
    %59 = arith.mulf %54, %58 : vector<2x8x8xf32>
    "tpu.trace_start"() <{level = 10 : i32, message = "bqk,bkd->bqd"}> : () -> ()
    %cst_25 = arith.constant dense<0.000000e+00> : vector<2x8x16xf32>
    %60 = tpu.matmul %59, %42, %cst_25 {dimension_numbers = #tpu.dot_dimension_numbers<[2], [1], [1], [2], [0, 0, 0, 1, 1, 2], [0], [0]>} : vector<2x8x8xf32>, vector<2x8x16xf32>, vector<2x8x16xf32> -> vector<2x8x16xf32>
    "tpu.trace_stop"() : () -> ()
    %61 = vector.shape_cast %60 : vector<2x8x16xf32> to vector<16x16xf32>
    %62 = vector.extract_strided_slice %32 {offsets = [0, 0], sizes = [16, 64], strides = [1, 1]} : vector<64x64xf32> to vector<16x64xf32>
    %cst_26 = arith.constant dense<0.000000e+00> : vector<16x64xf32>
    %63 = tpu.matmul %61, %62, %cst_26 {dimension_numbers = #tpu.dot_dimension_numbers<[1], [0], [0], [1], [0, 0, 1, 1], [], []>} : vector<16x16xf32>, vector<16x64xf32>, vector<16x64xf32> -> vector<16x64xf32>
    %64 = arith.addf %36, %63 : vector<16x64xf32>
    %65 = vector.extract_strided_slice %30 {offsets = [0, 16], sizes = [16, 16], strides = [1, 1]} : vector<16x192xf32> to vector<16x16xf32>
    %66 = vector.shape_cast %65 : vector<16x16xf32> to vector<2x8x16xf32>
    %67 = vector.extract_strided_slice %30 {offsets = [0, 80], sizes = [16, 16], strides = [1, 1]} : vector<16x192xf32> to vector<16x16xf32>
    %68 = vector.shape_cast %67 : vector<16x16xf32> to vector<2x8x16xf32>
    %69 = vector.extract_strided_slice %30 {offsets = [0, 144], sizes = [16, 16], strides = [1, 1]} : vector<16x192xf32> to vector<16x16xf32>
    %70 = vector.shape_cast %69 : vector<16x16xf32> to vector<2x8x16xf32>
    "tpu.trace_start"() <{level = 10 : i32, message = "bqd,bkd->bqk"}> : () -> ()
    %cst_27 = arith.constant dense<0.000000e+00> : vector<2x8x8xf32>
    %71 = tpu.matmul %66, %68, %cst_27 {dimension_numbers = #tpu.dot_dimension_numbers<[2], [2], [1], [1], [0, 0, 0, 1, 1, 1], [0], [0]>} : vector<2x8x16xf32>, vector<2x8x16xf32>, vector<2x8x8xf32> -> vector<2x8x8xf32>
    %cst_28 = arith.constant -1.000000e+30 : f32
    "tpu.trace_stop"() : () -> ()
    %72 = vector.shape_cast %35 : vector<1x8x8xi1> to vector<1x8x8xi1>
    %73 = vector.broadcast %72 : vector<1x8x8xi1> to vector<2x8x8xi1>
    %74 = vector.broadcast %cst_28 : f32 to vector<2x8x8xf32>
    %75 = arith.select %73, %74, %71 : vector<2x8x8xi1>, vector<2x8x8xf32>
    %cst_29 = arith.constant 2.500000e-01 : f32
    %76 = vector.broadcast %cst_29 : f32 to vector<2x8x8xf32>
    %77 = arith.mulf %75, %76 : vector<2x8x8xf32>
    %cst_30 = arith.constant dense<0xFF800000> : vector<2x8xf32>
    %78 = vector.multi_reduction <maximumf>, %77, %cst_30 [2] : vector<2x8x8xf32> to vector<2x8xf32>
    %79 = vector.shape_cast %78 : vector<2x8xf32> to vector<2x8x1xf32>
    %80 = vector.broadcast %79 : vector<2x8x1xf32> to vector<2x8x8xf32>
    %81 = arith.subf %77, %80 : vector<2x8x8xf32>
    %82 = math.exp %81 : vector<2x8x8xf32>
    %cst_31 = arith.constant dense<0.000000e+00> : vector<2x8xf32>
    %83 = vector.multi_reduction <add>, %82, %cst_31 [2] : vector<2x8x8xf32> to vector<2x8xf32>
    %84 = vector.shape_cast %83 : vector<2x8xf32> to vector<2x8x1xf32>
    %85 = tpu.reciprocal %84 {approx = true} : vector<2x8x1xf32> -> vector<2x8x1xf32>
    %86 = vector.broadcast %85 : vector<2x8x1xf32> to vector<2x8x8xf32>
    %87 = arith.mulf %82, %86 : vector<2x8x8xf32>
    "tpu.trace_start"() <{level = 10 : i32, message = "bqk,bkd->bqd"}> : () -> ()
    %cst_32 = arith.constant dense<0.000000e+00> : vector<2x8x16xf32>
    %88 = tpu.matmul %87, %70, %cst_32 {dimension_numbers = #tpu.dot_dimension_numbers<[2], [1], [1], [2], [0, 0, 0, 1, 1, 2], [0], [0]>} : vector<2x8x8xf32>, vector<2x8x16xf32>, vector<2x8x16xf32> -> vector<2x8x16xf32>
    "tpu.trace_stop"() : () -> ()
    %89 = vector.shape_cast %88 : vector<2x8x16xf32> to vector<16x16xf32>
    %90 = vector.extract_strided_slice %32 {offsets = [16, 0], sizes = [16, 64], strides = [1, 1]} : vector<64x64xf32> to vector<16x64xf32>
    %cst_33 = arith.constant dense<0.000000e+00> : vector<16x64xf32>
    %91 = tpu.matmul %89, %90, %cst_33 {dimension_numbers = #tpu.dot_dimension_numbers<[1], [0], [0], [1], [0, 0, 1, 1], [], []>} : vector<16x16xf32>, vector<16x64xf32>, vector<16x64xf32> -> vector<16x64xf32>
    %92 = arith.addf %64, %91 : vector<16x64xf32>
    %93 = vector.extract_strided_slice %30 {offsets = [0, 32], sizes = [16, 16], strides = [1, 1]} : vector<16x192xf32> to vector<16x16xf32>
    %94 = vector.shape_cast %93 : vector<16x16xf32> to vector<2x8x16xf32>
    %95 = vector.extract_strided_slice %30 {offsets = [0, 96], sizes = [16, 16], strides = [1, 1]} : vector<16x192xf32> to vector<16x16xf32>
    %96 = vector.shape_cast %95 : vector<16x16xf32> to vector<2x8x16xf32>
    %97 = vector.extract_strided_slice %30 {offsets = [0, 160], sizes = [16, 16], strides = [1, 1]} : vector<16x192xf32> to vector<16x16xf32>
    %98 = vector.shape_cast %97 : vector<16x16xf32> to vector<2x8x16xf32>
    "tpu.trace_start"() <{level = 10 : i32, message = "bqd,bkd->bqk"}> : () -> ()
    %cst_34 = arith.constant dense<0.000000e+00> : vector<2x8x8xf32>
    %99 = tpu.matmul %94, %96, %cst_34 {dimension_numbers = #tpu.dot_dimension_numbers<[2], [2], [1], [1], [0, 0, 0, 1, 1, 1], [0], [0]>} : vector<2x8x16xf32>, vector<2x8x16xf32>, vector<2x8x8xf32> -> vector<2x8x8xf32>
    %cst_35 = arith.constant -1.000000e+30 : f32
    "tpu.trace_stop"() : () -> ()
    %100 = vector.shape_cast %35 : vector<1x8x8xi1> to vector<1x8x8xi1>
    %101 = vector.broadcast %100 : vector<1x8x8xi1> to vector<2x8x8xi1>
    %102 = vector.broadcast %cst_35 : f32 to vector<2x8x8xf32>
    %103 = arith.select %101, %102, %99 : vector<2x8x8xi1>, vector<2x8x8xf32>
    %cst_36 = arith.constant 2.500000e-01 : f32
    %104 = vector.broadcast %cst_36 : f32 to vector<2x8x8xf32>
    %105 = arith.mulf %103, %104 : vector<2x8x8xf32>
    %cst_37 = arith.constant dense<0xFF800000> : vector<2x8xf32>
    %106 = vector.multi_reduction <maximumf>, %105, %cst_37 [2] : vector<2x8x8xf32> to vector<2x8xf32>
    %107 = vector.shape_cast %106 : vector<2x8xf32> to vector<2x8x1xf32>
    %108 = vector.broadcast %107 : vector<2x8x1xf32> to vector<2x8x8xf32>
    %109 = arith.subf %105, %108 : vector<2x8x8xf32>
    %110 = math.exp %109 : vector<2x8x8xf32>
    %cst_38 = arith.constant dense<0.000000e+00> : vector<2x8xf32>
    %111 = vector.multi_reduction <add>, %110, %cst_38 [2] : vector<2x8x8xf32> to vector<2x8xf32>
    %112 = vector.shape_cast %111 : vector<2x8xf32> to vector<2x8x1xf32>
    %113 = tpu.reciprocal %112 {approx = true} : vector<2x8x1xf32> -> vector<2x8x1xf32>
    %114 = vector.broadcast %113 : vector<2x8x1xf32> to vector<2x8x8xf32>
    %115 = arith.mulf %110, %114 : vector<2x8x8xf32>
    "tpu.trace_start"() <{level = 10 : i32, message = "bqk,bkd->bqd"}> : () -> ()
    %cst_39 = arith.constant dense<0.000000e+00> : vector<2x8x16xf32>
    %116 = tpu.matmul %115, %98, %cst_39 {dimension_numbers = #tpu.dot_dimension_numbers<[2], [1], [1], [2], [0, 0, 0, 1, 1, 2], [0], [0]>} : vector<2x8x8xf32>, vector<2x8x16xf32>, vector<2x8x16xf32> -> vector<2x8x16xf32>
    "tpu.trace_stop"() : () -> ()
    %117 = vector.shape_cast %116 : vector<2x8x16xf32> to vector<16x16xf32>
    %118 = vector.extract_strided_slice %32 {offsets = [32, 0], sizes = [16, 64], strides = [1, 1]} : vector<64x64xf32> to vector<16x64xf32>
    %cst_40 = arith.constant dense<0.000000e+00> : vector<16x64xf32>
    %119 = tpu.matmul %117, %118, %cst_40 {dimension_numbers = #tpu.dot_dimension_numbers<[1], [0], [0], [1], [0, 0, 1, 1], [], []>} : vector<16x16xf32>, vector<16x64xf32>, vector<16x64xf32> -> vector<16x64xf32>
    %120 = arith.addf %92, %119 : vector<16x64xf32>
    %121 = vector.extract_strided_slice %30 {offsets = [0, 48], sizes = [16, 16], strides = [1, 1]} : vector<16x192xf32> to vector<16x16xf32>
    %122 = vector.shape_cast %121 : vector<16x16xf32> to vector<2x8x16xf32>
    %123 = vector.extract_strided_slice %30 {offsets = [0, 112], sizes = [16, 16], strides = [1, 1]} : vector<16x192xf32> to vector<16x16xf32>
    %124 = vector.shape_cast %123 : vector<16x16xf32> to vector<2x8x16xf32>
    %125 = vector.extract_strided_slice %30 {offsets = [0, 176], sizes = [16, 16], strides = [1, 1]} : vector<16x192xf32> to vector<16x16xf32>
    %126 = vector.shape_cast %125 : vector<16x16xf32> to vector<2x8x16xf32>
    "tpu.trace_start"() <{level = 10 : i32, message = "bqd,bkd->bqk"}> : () -> ()
    %cst_41 = arith.constant dense<0.000000e+00> : vector<2x8x8xf32>
    %127 = tpu.matmul %122, %124, %cst_41 {dimension_numbers = #tpu.dot_dimension_numbers<[2], [2], [1], [1], [0, 0, 0, 1, 1, 1], [0], [0]>} : vector<2x8x16xf32>, vector<2x8x16xf32>, vector<2x8x8xf32> -> vector<2x8x8xf32>
    %cst_42 = arith.constant -1.000000e+30 : f32
    "tpu.trace_stop"() : () -> ()
    %128 = vector.shape_cast %35 : vector<1x8x8xi1> to vector<1x8x8xi1>
    %129 = vector.broadcast %128 : vector<1x8x8xi1> to vector<2x8x8xi1>
    %130 = vector.broadcast %cst_42 : f32 to vector<2x8x8xf32>
    %131 = arith.select %129, %130, %127 : vector<2x8x8xi1>, vector<2x8x8xf32>
    %cst_43 = arith.constant 2.500000e-01 : f32
    %132 = vector.broadcast %cst_43 : f32 to vector<2x8x8xf32>
    %133 = arith.mulf %131, %132 : vector<2x8x8xf32>
    %cst_44 = arith.constant dense<0xFF800000> : vector<2x8xf32>
    %134 = vector.multi_reduction <maximumf>, %133, %cst_44 [2] : vector<2x8x8xf32> to vector<2x8xf32>
    %135 = vector.shape_cast %134 : vector<2x8xf32> to vector<2x8x1xf32>
    %136 = vector.broadcast %135 : vector<2x8x1xf32> to vector<2x8x8xf32>
    %137 = arith.subf %133, %136 : vector<2x8x8xf32>
    %138 = math.exp %137 : vector<2x8x8xf32>
    %cst_45 = arith.constant dense<0.000000e+00> : vector<2x8xf32>
    %139 = vector.multi_reduction <add>, %138, %cst_45 [2] : vector<2x8x8xf32> to vector<2x8xf32>
    %140 = vector.shape_cast %139 : vector<2x8xf32> to vector<2x8x1xf32>
    %141 = tpu.reciprocal %140 {approx = true} : vector<2x8x1xf32> -> vector<2x8x1xf32>
    %142 = vector.broadcast %141 : vector<2x8x1xf32> to vector<2x8x8xf32>
    %143 = arith.mulf %138, %142 : vector<2x8x8xf32>
    "tpu.trace_start"() <{level = 10 : i32, message = "bqk,bkd->bqd"}> : () -> ()
    %cst_46 = arith.constant dense<0.000000e+00> : vector<2x8x16xf32>
    %144 = tpu.matmul %143, %126, %cst_46 {dimension_numbers = #tpu.dot_dimension_numbers<[2], [1], [1], [2], [0, 0, 0, 1, 1, 2], [0], [0]>} : vector<2x8x8xf32>, vector<2x8x16xf32>, vector<2x8x16xf32> -> vector<2x8x16xf32>
    "tpu.trace_stop"() : () -> ()
    %145 = vector.shape_cast %144 : vector<2x8x16xf32> to vector<16x16xf32>
    %146 = vector.extract_strided_slice %32 {offsets = [48, 0], sizes = [16, 64], strides = [1, 1]} : vector<64x64xf32> to vector<16x64xf32>
    %cst_47 = arith.constant dense<0.000000e+00> : vector<16x64xf32>
    %147 = tpu.matmul %145, %146, %cst_47 {dimension_numbers = #tpu.dot_dimension_numbers<[1], [0], [0], [1], [0, 0, 1, 1], [], []>} : vector<16x16xf32>, vector<16x64xf32>, vector<16x64xf32> -> vector<16x64xf32>
    %148 = arith.addf %120, %147 : vector<16x64xf32>
    %149 = arith.addf %3, %148 : vector<16x64xf32>
    %c0_48 = arith.constant 0 : index
    %c0_49 = arith.constant 0 : index
    %c0_50 = arith.constant 0 : index
    %150 = vector.load %arg4[%c0_48, %c0_49, %c0_50] : memref<1x1x64xf32, #tpu.memory_space<vmem>>, vector<1x1x64xf32>
    %151 = vector.shape_cast %150 : vector<1x1x64xf32> to vector<1x64xf32>
    %152 = vector.broadcast %151 : vector<1x64xf32> to vector<16x64xf32>
    %153 = arith.addf %149, %152 : vector<16x64xf32>
    %c0_51 = arith.constant 0 : index
    %c0_52 = arith.constant 0 : index
    %c0_53 = arith.constant 0 : index
    %154 = vector.load %arg7[%c0_51, %c0_52, %c0_53] : memref<1x1x64xf32, #tpu.memory_space<vmem>>, vector<1x1x64xf32>
    %155 = vector.shape_cast %154 : vector<1x1x64xf32> to vector<1x64xf32>
    %c0_54 = arith.constant 0 : index
    %c0_55 = arith.constant 0 : index
    %c0_56 = arith.constant 0 : index
    %156 = vector.load %arg8[%c0_54, %c0_55, %c0_56] : memref<1x1x64xf32, #tpu.memory_space<vmem>>, vector<1x1x64xf32>
    %157 = vector.shape_cast %156 : vector<1x1x64xf32> to vector<1x64xf32>
    %cst_57 = arith.constant dense<0.000000e+00> : vector<16xf32>
    %158 = vector.multi_reduction <add>, %153, %cst_57 [1] : vector<16x64xf32> to vector<16xf32>
    %159 = vector.shape_cast %158 : vector<16xf32> to vector<16x1xf32>
    %cst_58 = arith.constant 6.400000e+01 : f32
    %160 = vector.broadcast %cst_58 : f32 to vector<16x1xf32>
    %161 = arith.divf %159, %160 : vector<16x1xf32>
    %162 = vector.broadcast %161 : vector<16x1xf32> to vector<16x64xf32>
    %163 = arith.subf %153, %162 : vector<16x64xf32>
    %164 = arith.mulf %163, %163 : vector<16x64xf32>
    %cst_59 = arith.constant dense<0.000000e+00> : vector<16xf32>
    %165 = vector.multi_reduction <add>, %164, %cst_59 [1] : vector<16x64xf32> to vector<16xf32>
    %166 = vector.shape_cast %165 : vector<16xf32> to vector<16x1xf32>
    %cst_60 = arith.constant 6.400000e+01 : f32
    %167 = vector.broadcast %cst_60 : f32 to vector<16x1xf32>
    %168 = arith.divf %166, %167 : vector<16x1xf32>
    %cst_61 = arith.constant 9.99999974E-6 : f32
    %169 = vector.broadcast %cst_61 : f32 to vector<16x1xf32>
    %170 = arith.addf %168, %169 : vector<16x1xf32>
    %171 = math.rsqrt %170 : vector<16x1xf32>
    %172 = vector.broadcast %171 : vector<16x1xf32> to vector<16x64xf32>
    %173 = arith.mulf %163, %172 : vector<16x64xf32>
    %174 = vector.broadcast %155 : vector<1x64xf32> to vector<16x64xf32>
    %175 = arith.mulf %174, %173 : vector<16x64xf32>
    %176 = vector.broadcast %157 : vector<1x64xf32> to vector<16x64xf32>
    %177 = arith.addf %175, %176 : vector<16x64xf32>
    %c0_62 = arith.constant 0 : index
    %c0_63 = arith.constant 0 : index
    %c0_64 = arith.constant 0 : index
    %178 = vector.load %arg9[%c0_62, %c0_63, %c0_64] : memref<1x64x256xf32, #tpu.memory_space<vmem>>, vector<1x64x256xf32>
    %179 = vector.shape_cast %178 : vector<1x64x256xf32> to vector<64x256xf32>
    %cst_65 = arith.constant dense<0.000000e+00> : vector<16x256xf32>
    %180 = tpu.matmul %177, %179, %cst_65 {dimension_numbers = #tpu.dot_dimension_numbers<[1], [0], [0], [1], [0, 0, 1, 1], [], []>} : vector<16x64xf32>, vector<64x256xf32>, vector<16x256xf32> -> vector<16x256xf32>
    %c0_66 = arith.constant 0 : index
    %c0_67 = arith.constant 0 : index
    %c0_68 = arith.constant 0 : index
    %181 = vector.load %arg10[%c0_66, %c0_67, %c0_68] : memref<1x1x256xf32, #tpu.memory_space<vmem>>, vector<1x1x256xf32>
    %182 = vector.shape_cast %181 : vector<1x1x256xf32> to vector<1x256xf32>
    %183 = vector.broadcast %182 : vector<1x256xf32> to vector<16x256xf32>
    %184 = arith.addf %180, %183 : vector<16x256xf32>
    %185 = arith.mulf %184, %184 : vector<16x256xf32>
    %186 = arith.mulf %185, %184 : vector<16x256xf32>
    %cst_69 = arith.constant 4.471500e-02 : f32
    %187 = vector.broadcast %cst_69 : f32 to vector<16x256xf32>
    %188 = arith.mulf %187, %186 : vector<16x256xf32>
    %189 = arith.addf %184, %188 : vector<16x256xf32>
    %cst_70 = arith.constant 5.000000e-01 : f32
    %190 = vector.broadcast %cst_70 : f32 to vector<16x256xf32>
    %191 = arith.mulf %190, %184 : vector<16x256xf32>
    %cst_71 = arith.constant 0.797884583 : f32
    %192 = vector.broadcast %cst_71 : f32 to vector<16x256xf32>
    %193 = arith.mulf %192, %189 : vector<16x256xf32>
    %194 = math.tanh %193 : vector<16x256xf32>
    %195 = arith.mulf %191, %194 : vector<16x256xf32>
    %c0_72 = arith.constant 0 : index
    %c0_73 = arith.constant 0 : index
    %c0_74 = arith.constant 0 : index
    %196 = vector.load %arg11[%c0_72, %c0_73, %c0_74] : memref<1x256x64xf32, #tpu.memory_space<vmem>>, vector<1x256x64xf32>
    %197 = vector.shape_cast %196 : vector<1x256x64xf32> to vector<256x64xf32>
    %cst_75 = arith.constant dense<0.000000e+00> : vector<16x64xf32>
    %198 = tpu.matmul %195, %197, %cst_75 {dimension_numbers = #tpu.dot_dimension_numbers<[1], [0], [0], [1], [0, 0, 1, 1], [], []>} : vector<16x256xf32>, vector<256x64xf32>, vector<16x64xf32> -> vector<16x64xf32>
    %c0_76 = arith.constant 0 : index
    %c0_77 = arith.constant 0 : index
    %c0_78 = arith.constant 0 : index
    %199 = vector.load %arg12[%c0_76, %c0_77, %c0_78] : memref<1x1x64xf32, #tpu.memory_space<vmem>>, vector<1x1x64xf32>
    %200 = vector.shape_cast %199 : vector<1x1x64xf32> to vector<1x64xf32>
    %201 = vector.broadcast %200 : vector<1x64xf32> to vector<16x64xf32>
    %202 = arith.addf %198, %201 : vector<16x64xf32>
    %203 = arith.addf %153, %202 : vector<16x64xf32>
    %c0_79 = arith.constant 0 : index
    %c0_80 = arith.constant 0 : index
    %204 = vector.load %arg17[%c0_79, %c0_80] : memref<16x64xf32, #tpu.memory_space<vmem>>, vector<16x64xf32>
    tpu.vector_store %arg17[%c0_79, %c0_80], %203 {strides = array<i32>} : memref<16x64xf32, #tpu.memory_space<vmem>>, vector<16x64xf32>,
    %c1_i32 = arith.constant 1 : i32
    %205 = arith.cmpi eq, %arg0, %c1_i32 : i32
    %206 = arith.extui %205 : i1 to i32
    %c0_i32_81 = arith.constant 0 : i32
    %207 = arith.cmpi ne, %206, %c0_i32_81 : i32
    scf.if %207 {
      %c0_82 = arith.constant 0 : index
      %c0_83 = arith.constant 0 : index
      %208 = vector.load %arg13[%c0_82, %c0_83] : memref<1x64xf32, #tpu.memory_space<vmem>>, vector<1x64xf32>
      %c0_84 = arith.constant 0 : index
      %c0_85 = arith.constant 0 : index
      %209 = vector.load %arg14[%c0_84, %c0_85] : memref<1x64xf32, #tpu.memory_space<vmem>>, vector<1x64xf32>
      %cst_86 = arith.constant dense<0.000000e+00> : vector<16xf32>
      %210 = vector.multi_reduction <add>, %203, %cst_86 [1] : vector<16x64xf32> to vector<16xf32>
      %211 = vector.shape_cast %210 : vector<16xf32> to vector<16x1xf32>
      %cst_87 = arith.constant 6.400000e+01 : f32
      %212 = vector.broadcast %cst_87 : f32 to vector<16x1xf32>
      %213 = arith.divf %211, %212 : vector<16x1xf32>
      %214 = vector.broadcast %213 : vector<16x1xf32> to vector<16x64xf32>
      %215 = arith.subf %203, %214 : vector<16x64xf32>
      %216 = arith.mulf %215, %215 : vector<16x64xf32>
      %cst_88 = arith.constant dense<0.000000e+00> : vector<16xf32>
      %217 = vector.multi_reduction <add>, %216, %cst_88 [1] : vector<16x64xf32> to vector<16xf32>
      %218 = vector.shape_cast %217 : vector<16xf32> to vector<16x1xf32>
      %cst_89 = arith.constant 6.400000e+01 : f32
      %219 = vector.broadcast %cst_89 : f32 to vector<16x1xf32>
      %220 = arith.divf %218, %219 : vector<16x1xf32>
      %cst_90 = arith.constant 9.99999974E-6 : f32
      %221 = vector.broadcast %cst_90 : f32 to vector<16x1xf32>
      %222 = arith.addf %220, %221 : vector<16x1xf32>
      %223 = math.rsqrt %222 : vector<16x1xf32>
      %224 = vector.broadcast %223 : vector<16x1xf32> to vector<16x64xf32>
      %225 = arith.mulf %215, %224 : vector<16x64xf32>
      %226 = vector.broadcast %208 : vector<1x64xf32> to vector<16x64xf32>
      %227 = arith.mulf %226, %225 : vector<16x64xf32>
      %228 = vector.broadcast %209 : vector<1x64xf32> to vector<16x64xf32>
      %229 = arith.addf %227, %228 : vector<16x64xf32>
      %c0_91 = arith.constant 0 : index
      %c0_92 = arith.constant 0 : index
      %230 = vector.load %arg15[%c0_91, %c0_92] : memref<64x256xf32, #tpu.memory_space<vmem>>, vector<64x256xf32>
      %cst_93 = arith.constant dense<0.000000e+00> : vector<16x256xf32>
      %231 = tpu.matmul %229, %230, %cst_93 {dimension_numbers = #tpu.dot_dimension_numbers<[1], [0], [0], [1], [0, 0, 1, 1], [], []>} : vector<16x64xf32>, vector<64x256xf32>, vector<16x256xf32> -> vector<16x256xf32>
      %c0_94 = arith.constant 0 : index
      %c0_95 = arith.constant 0 : index
      %232 = vector.load %arg16[%c0_94, %c0_95] : memref<16x256xf32, #tpu.memory_space<vmem>>, vector<16x256xf32>
      tpu.vector_store %arg16[%c0_94, %c0_95], %231 {strides = array<i32>} : memref<16x256xf32, #tpu.memory_space<vmem>>, vector<16x256xf32>,
    } else {
    }
    return
  }
  func.func @transform_0(%arg0: i32) -> (i32, i32) {
    %c0_i32 = arith.constant 0 : i32
    %c0_i32_0 = arith.constant 0 : i32
    %c0_i32_1 = arith.constant 0 : i32
    return %c0_i32, %c0_i32_0 : i32, i32
  }
  func.func @transform_1(%arg0: i32) -> (i32, i32, i32) {
    %c0_i32 = arith.constant 0 : i32
    %c0_i32_0 = arith.constant 0 : i32
    %c0_i32_1 = arith.constant 0 : i32
    return %arg0, %c0_i32, %c0_i32_0 : i32, i32, i32
  }
  func.func @transform_2(%arg0: i32) -> (i32, i32, i32) {
    %c0_i32 = arith.constant 0 : i32
    %c0_i32_0 = arith.constant 0 : i32
    %c0_i32_1 = arith.constant 0 : i32
    return %arg0, %c0_i32, %c0_i32_0 : i32, i32, i32
  }
  func.func @transform_3(%arg0: i32) -> (i32, i32, i32) {
    %c0_i32 = arith.constant 0 : i32
    %c0_i32_0 = arith.constant 0 : i32
    %c0_i32_1 = arith.constant 0 : i32
    return %arg0, %c0_i32, %c0_i32_0 : i32, i32, i32
  }
  func.func @transform_4(%arg0: i32) -> (i32, i32, i32) {
    %c0_i32 = arith.constant 0 : i32
    %c0_i32_0 = arith.constant 0 : i32
    %c0_i32_1 = arith.constant 0 : i32
    return %arg0, %c0_i32, %c0_i32_0 : i32, i32, i32
  }
  func.func @transform_5(%arg0: i32) -> (i32, i32, i32) {
    %c0_i32 = arith.constant 0 : i32
    %c0_i32_0 = arith.constant 0 : i32
    %c0_i32_1 = arith.constant 0 : i32
    return %arg0, %c0_i32, %c0_i32_0 : i32, i32, i32
  }
  func.func @transform_6(%arg0: i32) -> (i32, i32, i32) {
    %c0_i32 = arith.constant 0 : i32
    %c0_i32_0 = arith.constant 0 : i32
    %c0_i32_1 = arith.constant 0 : i32
    return %arg0, %c0_i32, %c0_i32_0 : i32, i32, i32
  }
  func.func @transform_7(%arg0: i32) -> (i32, i32, i32) {
    %c0_i32 = arith.constant 0 : i32
    %c0_i32_0 = arith.constant 0 : i32
    %c0_i32_1 = arith.constant 0 : i32
    return %arg0, %c0_i32, %c0_i32_0 : i32, i32, i32
  }
  func.func @transform_8(%arg0: i32) -> (i32, i32, i32) {
    %c0_i32 = arith.constant 0 : i32
    %c0_i32_0 = arith.constant 0 : i32
    %c0_i32_1 = arith.constant 0 : i32
    return %arg0, %c0_i32, %c0_i32_0 : i32, i32, i32
  }
  func.func @transform_9(%arg0: i32) -> (i32, i32, i32) {
    %c0_i32 = arith.constant 0 : i32
    %c0_i32_0 = arith.constant 0 : i32
    %c0_i32_1 = arith.constant 0 : i32
    return %arg0, %c0_i32, %c0_i32_0 : i32, i32, i32
  }
  func.func @transform_10(%arg0: i32) -> (i32, i32, i32) {
    %c0_i32 = arith.constant 0 : i32
    %c0_i32_0 = arith.constant 0 : i32
    %c0_i32_1 = arith.constant 0 : i32
    return %arg0, %c0_i32, %c0_i32_0 : i32, i32, i32
  }
  func.func @transform_11(%arg0: i32) -> (i32, i32, i32) {
    %c0_i32 = arith.constant 0 : i32
    %c0_i32_0 = arith.constant 0 : i32
    %c0_i32_1 = arith.constant 0 : i32
    return %arg0, %c0_i32, %c0_i32_0 : i32, i32, i32
  }
  func.func @transform_12(%arg0: i32) -> (i32, i32) {
    %c0_i32 = arith.constant 0 : i32
    %c0_i32_0 = arith.constant 0 : i32
    %c0_i32_1 = arith.constant 0 : i32
    return %c0_i32, %c0_i32_0 : i32, i32
  }
  func.func @transform_13(%arg0: i32) -> (i32, i32) {
    %c0_i32 = arith.constant 0 : i32
    %c0_i32_0 = arith.constant 0 : i32
    %c0_i32_1 = arith.constant 0 : i32
    return %c0_i32, %c0_i32_0 : i32, i32
  }
  func.func @transform_14(%arg0: i32) -> (i32, i32) {
    %c0_i32 = arith.constant 0 : i32
    %c0_i32_0 = arith.constant 0 : i32
    %c0_i32_1 = arith.constant 0 : i32
    return %c0_i32, %c0_i32_0 : i32, i32
  }
  func.func @transform_15(%arg0: i32) -> (i32, i32) {
    %c0_i32 = arith.constant 0 : i32
    %c0_i32_0 = arith.constant 0 : i32
    %c0_i32_1 = arith.constant 0 : i32
    return %c0_i32, %c0_i32_0 : i32, i32
  }
}

</mosaic_0001>

<bundles_post_ra>
// kernel: tpu_custom_call.1
= control target key start
LH: loop header
LB: loop body
LE: loop exit
PB: predicated region body
PF: predicated region fallthrough
CT: control target
= control target key end

     0   :  { %s4573_s0 = inlined_call_operand.hbm [shape: f32[16,64], index: 0, kind: input, shape index: {}]   ;;  %s4574_s1 = inlined_call_operand.vmem [shape: f32[2,64,192], index: 1, kind: input, shape index: {}]   ;;  %s4575_s2 = inlined_call_operand.vmem [shape: f32[2,64,64], index: 2, kind: input, shape index: {}]   ;;  %s4576_s3 = inlined_call_operand.hbm [shape: f32[2,1,64], index: 3, kind: input, shape index: {}]   ;;  %s4577_s4 = inlined_call_operand.hbm [shape: f32[2,1,64], index: 4, kind: input, shape index: {}]   ;;  %s4578_s5 = inlined_call_operand.vmem [shape: f32[2,1,64], index: 5, kind: input, shape index: {}]   ;;  %s4579_s6 = inlined_call_operand.vmem [shape: f32[2,1,64], index: 6, kind: input, shape index: {}]   ;;  %s4580_s7 = inlined_call_operand.hbm [shape: f32[2,1,64], index: 7, kind: input, shape index: {}]   ;;  %s4581_s8 = inlined_call_operand.vmem [shape: f32[2,64,256], index: 8, kind: input, shape index: {}]   ;;  %s4582_s9 = inlined_call_operand.vmem [shape: f32[2,1,256], index: 9, kind: input, shape index: {}]   ;;  %s4583_s10 = inlined_call_operand.vmem [shape: f32[2,256,64], index: 10, kind: input, shape index: {}]   ;;  %s4584_s11 = inlined_call_operand.vmem [shape: f32[2,1,64], index: 11, kind: input, shape index: {}]   ;;  %s4585_s12 = inlined_call_operand.vmem [shape: f32[1,64], index: 12, kind: input, shape index: {}]   ;;  %s4586_s13 = inlined_call_operand.vmem [shape: f32[1,64], index: 13, kind: input, shape index: {}]   ;;  %s4587_s14 = inlined_call_operand.vmem [shape: f32[64,256], index: 14, kind: input, shape index: {}]   ;;  %s4588_s15 = inlined_call_operand.hbm [shape: f32[16,256], index: 15, kind: output, shape index: {}]  }
   0x1   :  { %4596 = sst [smem:[#allocation19_spill]] %s4573_s0 }
   0x2   :  { %4597 = sst [smem:[#allocation20_spill]] %s4576_s3 }
   0x3   :  { %4598 = sst [smem:[#allocation21_spill]] %s4582_s9 }
   0x4   :  { %4599 = sst [smem:[#allocation22_spill]] %s4583_s10 }
   0x5   :  { %4600 = sst [smem:[#allocation23_spill]] %s4584_s11 }
   0x6   :  { %4601 = sst [smem:[#allocation24_spill]] %s4585_s12 }
   0x7   :  { %4602 = sst [smem:[#allocation25_spill]] %s4586_s13 }
   0x8   :  { %4603 = sst [smem:[#allocation26_spill]] %s4587_s14 }
   0x9   :  { %4604 = sst [smem:[#allocation27_spill]] %s4588_s15 }
   0xa   :  { %20 = vsyncpa [#allocation4], 0 }
   0xb   :  { %21 = vsyncpa [#allocation7], 0 }
   0xc   :  { %23 = vsyncpa [#allocation7 + $0x1], 0 }
   0xd   :  { %24 = vsyncpa [#allocation10], 0 }
   0xe   :  { %26 = vsyncpa [#allocation10 + $0x1], 0 }
   0xf   :  { %27 = vsyncpa [#allocation5], 0  ;;  %s3916_s18 = smov 0   ;;  %s3918_s19 = smov 0  }
  0x10   :  { %s3920_s20 = smov 0   ;;  %s3922_s21 = smov 0  }
  0x11 LB: > { %4605 = sst [smem:[#allocation16_spill]] %s3812_s20  ;;  %s3937_s22 = sadd.s32 1, %s3816_s21   ;;  %s3816_s21 = sphi %s3922_s21, %s4635_s21   ;;  %s3812_s20 = sphi %s3920_s20, %s4637_s20   ;;  %s3808_s19 = sphi %s3918_s19, %s4639_s19   ;;  %s3804_s18 = sphi %s3916_s18, %s4638_s18  }
  0x12   : > { %4606 = sst [smem:[#allocation17_spill]] %s3937_s22  ;;  %s113_s23 = sadd.s32 1, %s3812_s20 }
  0x13   : > { %s110_s24 = ssub.s32 %s3816_s21, %s3937_s22  ;;  %p120_p0 = scmp.ne.s32.totalorder %s3812_s20, %s3808_s19 }
  0x14   : > { %p111_p1 = scmp.eq.s32.totalorder %s110_s24, 0  ;;  %p121_p2 = scmp.eq.s32.totalorder %s3816_s21, 0 }
  0x15   : > { %p3533_p3 = scmp.lt.s32.totalorder %s3816_s21, 2  ;;  %s480_s26 = sand.u32 1, %s3816_s21  }
  0x16   : > { %s3947_s25 = scalar_select %p111_p1, %s3812_s20, %s113_s23  }
  0x17   : > { %p122_p4 = por %p121_p2, %p120_p0  ;;  %s3951_s27 = sand.u32 1, %s3812_s20  }
  0x18   : > { %4607 = sst [smem:[#allocation18_spill]] %s3947_s25  ;;  %s3954_s28 = sshll.u32 %s3816_s21, 4 }
  0x19   : > { %s4608_s3 = sld [smem:[#allocation20_spill]]  ;;  %s483_s17 = scalar_lea.vmem [#allocation6], %s3951_s27 }
  0x1a   : > { %s490_s24 = sshll.u32 %s483_s17, 4  ;;  %p3965_p5 = pnand %p3533_p3, %p122_p4  ;;  %s3963_s24 = int_to_ptr.vmem [resolvable:$true] %s490_s24 }
  0x1b   : > { %s3970_s25 = sadd.s32 4294967295, %s3816_s21   ;;  %s3972_s20 = scalar_lea.sflag [#allocation7], %s480_s26 }
  0x1c   : > { %p3978_p7 = pneg %p3965_p5 }
  0x1f   : > { %s3960_s16 = scalar_lea.hbm %s4608_s3, %s3954_s28  ;;  %s3641_s15 = scalar_lea.hbm %s4608_s3, 32 }
  0x20   : > { %s3636_s22 = scalar_lea.hbm %s3960_s16, 16  ;;  %p3642_p10 = scmp.lt.s32.totalorder %s3960_s16, %s4608_s3 }
  0x21   : > { %p3637_p6 = scmp.ne.s32.totalorder %s3960_s16, %s3636_s22  ;;  %p3643_p11 = scmp.lt.s32.totalorder %s3641_s15, %s3636_s22 }
  0x23   : > { %p3639_p8 = pnand %p3978_p7, %p3637_p6  ;;  %p3644_p12 = por %p3643_p11, %p3642_p10 }
  0x25   : > { %p3640_p9 = pneg %p3639_p8 }
  0x27   : > { %p3645_p13 = pnand %p3644_p12, %p3640_p9 }
  0x29   : > { %3648 = shalt.err (!%p3645_p13)
}
  0x2a   : > { %s3649_s26 = scalar_lea.vmem %s3963_s24, 16  ;;  %s3818_s14 = smov [#allocation6]  }
  0x2b   : > { %p3650_p0 = scmp.ne.s32.totalorder %s3963_s24, %s3649_s26  ;;  %s3654_s30 = sshll.u32 %s3818_s14, 4  ;;  %s3655_s30 = int_to_ptr.vmem [resolvable:$false] %s3654_s30 }
  0x2c   : > { %s3656_s17 = scalar_lea.vmem %s3655_s30, 32  ;;  %p3657_p3 = scmp.lt.s32.totalorder %s3963_s24, %s3655_s30 }
  0x2d   : > { %p3652_p1 = pnand %p3650_p0, %p3978_p7  ;;  %p3658_p4 = scmp.lt.s32.totalorder %s3656_s17, %s3649_s26 }
  0x2f   : > { %p3653_p2 = pneg %p3652_p1  ;;  %p3659_p6 = por %p3658_p4, %p3657_p3 }
  0x31   : > { %p3660_p8 = pnand %p3659_p6, %p3653_p2 }
  0x33   : > { %3663 = shalt.err (!%p3660_p8)
}
  0x34   : > { %3525 = dma.hbm_to_vmem [thread:$0]  (!%p3965_p5), %s3960_s16, 16, %s3963_s24, %s3972_s20  }
  0x35   : > { %p126_p9 = scmp.ne.s32.totalorder %s3808_s19, %s3804_s18  ;;  %p4593_p10 = scmp.eq.s32.totalorder %s3970_s25, 0 }
  0x36   : > { %p3205_p11 = scmp.ge.s32.totalorder %s3816_s21, 1  ;;  %p429_p12 = scmp.lt.s32.totalorder %s3816_s21, 3 }
  0x37   : > { %p4008_p13 = por %p4593_p10, %p126_p9  ;;  %s3819_s14 = smov [#allocation3]  }
  0x38   : > { %p4013_p1 = pnand %p3205_p11, %p429_p12  ;;  %s441_s15 = sshll.u32 %s3819_s14, 4  ;;  %s442_s15 = int_to_ptr.vmem [resolvable:$true] %s441_s15 }
  0x39   : > { %s4611_s12 = scalar_select %p4008_p13, 1, 0 }
  0x3a   : > { %s4612_s13 = scalar_select %p4013_p1, 1, 0 }
  0x3b   : > { %p3518_p2 = pneg %p4013_p1  ;;  %s4029_s16 = scalar_lea.hbm %s4577_s4, %s3954_s28 }
  0x3c   : > { %s500_s24 = scalar_lea.vmem [#allocation8], %s3951_s27  ;;  %s3675_s30 = scalar_lea.vmem %s442_s15, 256 }
  0x3d   : > { %p4021_p3 = pnand %p3518_p2, %p4593_p10  ;;  %s507_s26 = sshll.u32 %s500_s24, 4  ;;  %s4032_s26 = int_to_ptr.vmem [resolvable:$true] %s507_s26 }
  0x3e   : > { %p3676_p6 = scmp.ne.s32.totalorder %s442_s15, %s3675_s30  ;;  %p3683_p11 = scmp.lt.s32.totalorder %s442_s15, %s442_s15 }
  0x3f   : > { %p3666_p4 = pneg %p4021_p3  ;;  %p3684_p12 = scmp.lt.s32.totalorder %s3675_s30, %s3675_s30 }
  0x41   : > { %p3678_p8 = pnand %p3676_p6, %p3666_p4  ;;  %p3685_p2 = por %p3684_p12, %p3683_p11 }
  0x43   : > { %p3679_p9 = pneg %p3678_p8 }
  0x45   : > { %p3686_p0 = pnand %p3685_p2, %p3679_p9 }
  0x47   : > { %3689 = shalt.err (!%p3686_p0)
}
  0x48   : > { %s3820_s17 = smov 128   ;;  %s3821_s14 = smov 8  }
  0x49   : > { %s4614_s0 = sld [smem:[#allocation19_spill]]  ;;  %s3690_s24 = scalar_lea.hbm %s4029_s16, 16 }
  0x4a   : > { %p3691_p4 = scmp.ne.s32.totalorder %s4029_s16, %s3690_s24  ;;  %s3695_s11 = scalar_lea.hbm %s4577_s4, 32 }
  0x4b   : > { %p3696_p0 = scmp.lt.s32.totalorder %s4029_s16, %s4577_s4  ;;  %p3697_p9 = scmp.lt.s32.totalorder %s3695_s11, %s3690_s24 }
  0x4c   : > { %p3693_p6 = pnand %p3691_p4, %p3978_p7 }
  0x4d   : > { %p3698_p11 = por %p3697_p9, %p3696_p0 }
  0x4e   : > { %p3694_p8 = pneg %p3693_p6 }
  0x4f   : > { %3521 = dma.hbm_to_vmem [thread:$0]  (!%p4021_p3), %s4614_s0, 256, %s442_s15, [#allocation4], %s3820_s17, %s3820_s17, %s3821_s14  }
  0x50   : > { %p3699_p12 = pnand %p3698_p11, %p3694_p8 }
  0x52   : > { %3702 = shalt.err (!%p3699_p12)
}
  0x53   : > { %s3703_s15 = scalar_lea.vmem %s4032_s26, 16  ;;  %s3822_s18 = smov [#allocation8]  }
  0x54   : > { %p3704_p3 = scmp.ne.s32.totalorder %s4032_s26, %s3703_s15  ;;  %s3708_s3 = sshll.u32 %s3822_s18, 4  ;;  %s3709_s3 = int_to_ptr.vmem [resolvable:$false] %s3708_s3 }
  0x55   : > { %s3710_s17 = scalar_lea.vmem %s3709_s3, 32  ;;  %p3711_p6 = scmp.lt.s32.totalorder %s4032_s26, %s3709_s3 }
  0x56   : > { %p3706_p2 = pnand %p3704_p3, %p3978_p7  ;;  %p3712_p10 = scmp.lt.s32.totalorder %s3710_s17, %s3703_s15 }
  0x58   : > { %p3707_p4 = pneg %p3706_p2  ;;  %p3713_p13 = por %p3712_p10, %p3711_p6 }
  0x5a   : > { %p3714_p1 = pnand %p3713_p13, %p3707_p4 }
  0x5c   : > { %3717 = shalt.err (!%p3714_p1)
}
  0x5d   : > { %3528 = dma.hbm_to_vmem [thread:$0]  (!%p3965_p5), %s4029_s16, 16, %s4032_s26, %s3972_s20  }
  0x5e   : > { %s4066_s11 = scalar_lea.hbm %s4580_s7, %s3954_s28  ;;  %s529_s14 = scalar_lea.vmem [#allocation9], %s3951_s27 }
  0x5f   : > { %s536_s21 = sshll.u32 %s529_s14, 4  ;;  %s527_s22 = scalar_lea.sflag [#allocation10], %s3951_s27  ;;  %s537_s21 = int_to_ptr.vmem [resolvable:$true] %s536_s21 }
  0x60   : > { %s3718_s24 = scalar_lea.hbm %s4066_s11, 16  ;;  %s3723_s20 = scalar_lea.hbm %s4580_s7, 32 }
  0x61   : > { %p3719_p10 = scmp.ne.s32.totalorder %s4066_s11, %s3718_s24  ;;  %p3724_p8 = scmp.lt.s32.totalorder %s4066_s11, %s4580_s7 }
  0x62   : > { %p3725_p0 = scmp.lt.s32.totalorder %s3723_s20, %s3718_s24 }
  0x63   : > { %p3721_p13 = pnand %p3719_p10, %p3978_p7 }
  0x64   : > { %p3726_p9 = por %p3725_p0, %p3724_p8 }
  0x65   : > { %p3722_p1 = pneg %p3721_p13 }
  0x67   : > { %p3727_p11 = pnand %p3726_p9, %p3722_p1 }
  0x69   : > { %3730 = shalt.err (!%p3727_p11)
}
  0x6a   : > { %s3731_s28 = scalar_lea.vmem %s537_s21, 16  ;;  %s3823_s27 = smov [#allocation9]  }
  0x6b   : > { %p3732_p12 = scmp.ne.s32.totalorder %s537_s21, %s3731_s28  ;;  %s3736_s18 = sshll.u32 %s3823_s27, 4  ;;  %s3737_s18 = int_to_ptr.vmem [resolvable:$false] %s3736_s18 }
  0x6c   : > { %s3738_s3 = scalar_lea.vmem %s3737_s18, 32  ;;  %p3739_p4 = scmp.lt.s32.totalorder %s537_s21, %s3737_s18 }
  0x6d   : > { %p3734_p3 = pnand %p3732_p12, %p3978_p7  ;;  %p3740_p6 = scmp.lt.s32.totalorder %s3738_s3, %s3731_s28 }
  0x6f   : > { %p3735_p2 = pneg %p3734_p3  ;;  %p3741_p10 = por %p3740_p6, %p3739_p4 }
  0x71   : > { %p3742_p13 = pnand %p3741_p10, %p3735_p2 }
  0x73   : > { %3745 = shalt.err (!%p3742_p13)
}
  0x74   : > { %3531 = dma.hbm_to_vmem [thread:$0]  (!%p3965_p5), %s4066_s11, 16, %s537_s21, %s527_s22  }
  0x75   : > { %p4615_p1 = scmp.ne.s32.totalorder %s4612_s13, 0 }
  0x76   : > { %p4616_p8 = scmp.eq.s32.totalorder (!%p4615_p1), %s3970_s25, 0 }
  0x77   : > { %574 = sbr.rel (%p4615_p1) target bundleno = 4869 (0x1305), region = 80 }
  0x7c   : > { %3787 = dma.done.wait (%p4616_p8), [#allocation4], 256   ;;  %p4617_p7 = pmov %p4616_p8 }
  0x7d   : > { %s580_s29 = sand.u32 1, %s3970_s25   ;;  %s4094_s17 = sand.u32 1, %s3808_s19  }
  0x7e   : > { %3789 = vsyncadd (%p4617_p7), [#allocation4], 4294967040  ;;  %s581_s9 = scalar_lea.sflag [#allocation7], %s580_s29  ;;  %p4618_p0 = scmp.ne.s32.totalorder %s4611_s12, 0 }
  0x80   : > { %3791 = dma.done.wait (%p4618_p0), %s581_s9, 32  }
  0x81   : > { %3793 = vsyncadd (%p4618_p0), %s581_s9, 4294967264  ;;  %s597_s10 = scalar_lea.sflag [#allocation10], %s4094_s17 }
  0x82   : > { %3795 = dma.done.wait (%p4618_p0), %s597_s10, 16  }
  0x83   : > { %3797 = vsyncadd (%p4618_p0), %s597_s10, 4294967280  ;;  %p681_p5 = scmp.lt.s32.totalorder %s3970_s25, 1  ;;  %s4619_s13 = sld [smem:[#allocation21_spill]] }
  0x84   : > { %s4620_s26 = sld [smem:[#allocation22_spill]]  ;;  %p4622_p9 = scmp.ne.s32.totalorder %s3970_s25, 0 }
  0x85   : > { %s4110_s14 = scalar_select %p681_p5, %s3970_s25, 1 }
  0x86   : > { %s4621_s3 = sld [smem:[#allocation23_spill]] }
  0x87   : > { %s3274_s21 = sshll.u32 %s4110_s14, 7  ;;  %s3275_s22 = sshll.u32 %s4110_s14, 6 }
  0x88   : > { %s4117_s15 = scalar_lea.vmem %s4574_s1, %s3274_s21  ;;  %s4122_s16 = scalar_lea.vmem %s4575_s2, %s3275_s22 }
  0x89   : > { %s4135_s11 = scalar_lea.vmem %s4581_s8, %s3274_s21  ;;  %s3219_s24 = sshll.u32 %s4110_s14, 1 }
  0x8a   : > { %s4141_s12 = scalar_lea.vmem %s4619_s13, %s3219_s24  ;;  %s3277_s22 = sshll.u32 %s4110_s14, 8 }
  0x8b   : > { %s4147_s28 = scalar_lea.vmem %s4620_s26, %s3277_s22  ;;  %717 = sbr.rel (%p4622_p9) target bundleno = 146 (0x92), region = 100 }
  0x8c   : > { %s713_s29 = scalar_lea.vmem %s4621_s3, %s4110_s14 }
  0x90   : > { %v718_v0 = vld [vmem:[#allocation3] sm:$0xff]  ;;  %vm720_vm0 = vcmask 523264   ;;  %v719_v1 = vld [vmem:[#allocation3 + $0x8] sm:$0xff] }
  0x91   : > { %721 = vst.msk [vmem:[#allocation2] sm:$0xff] %vm720_vm0, %v718_v0  ;;  %722 = vst.msk [vmem:[#allocation2 + $0x8] sm:$0xff] %vm720_vm0, %v719_v1 }
  0x92 PF: > { %vm727_vm1 = vcmask 523264   ;;  %v786_v16 = vld [vmem:[%s4117_s15 + $0x78] sm:$0xff]  ;;  %v785_v17 = vld [vmem:[%s4117_s15 + $0x70] sm:$0xff]  ;;  %v784_v18 = vld [vmem:[%s4117_s15 + $0x68] sm:$0xff]  ;;  %v3824_v32 = vmov 0.0   ;;  %s4623_s0 = scalar_lea.vmem [#allocation8], %s4094_s17  ;;  %s4624_s21 = scalar_lea.vmem %s4578_s5, %s4110_s14  ;;  %v878_v54 = vlaneseq }
  0x93   : > { %809 = vmatprep.subr.mxu0 %v786_v16  ;;  %v783_v19 = vld [vmem:[%s4117_s15 + $0x60] sm:$0xff]  ;;  %3472 = vmatprep.subr.mxu1 %v786_v16  ;;  %v782_v20 = vld [vmem:[%s4117_s15 + $0x58] sm:$0xff]  ;;  %v781_v21 = vld [vmem:[%s4117_s15 + $0x50] sm:$0xff]  ;;  %vm3825_vm2 = vmmov 0   ;;  %vm886_vm3 = vcmask 130048   ;;  %vm1044_vm5 = vcmask 64512   ;;  %s4628_s26 = scalar_lea.vmem %s4579_s6, %s4110_s14 }
  0x94   : > { %810 = vmatpush1.msra.mxu0 %v785_v17  ;;  %3480 = vmatpush1.msra.mxu1 %v785_v17  ;;  %v780_v22 = vld [vmem:[%s4117_s15 + $0x48] sm:$0xff]  ;;  %v779_v23 = vld [vmem:[%s4117_s15 + $0x40] sm:$0xff]  ;;  %v778_v24 = vld [vmem:[%s4117_s15 + $0x38] sm:$0xff]  ;;  %v4232_v55 = vshrl.u32 %v878_v54, 7  ;;  %v881_v56 = vand.u32 127, %v878_v54  ;;  %s3827_s27 = smov 48  }
  0x95   : > { %811 = vmatprep.subr.mxu0 %v784_v18  ;;  %3473 = vmatprep.subr.mxu1 %v784_v18  ;;  %v777_v25 = vld [vmem:[%s4117_s15 + $0x30] sm:$0xff]  ;;  %v776_v26 = vld [vmem:[%s4117_s15 + $0x28] sm:$0xff]  ;;  %v775_v27 = vld [vmem:[%s4117_s15 + $0x20] sm:$0xff]  ;;  %s3828_s9 = smov 112   ;;  %s3829_s10 = smov 32  }
  0x96   : > { %812 = vmatpush1.msra.mxu0 %v783_v19  ;;  %3481 = vmatpush1.msra.mxu1 %v783_v19  ;;  %v774_v28 = vld [vmem:[%s4117_s15 + $0x18] sm:$0xff]  ;;  %v773_v29 = vld [vmem:[%s4117_s15 + $0x10] sm:$0xff]  ;;  %v772_v30 = vld [vmem:[%s4117_s15 + $0x8] sm:$0xff]  ;;  %vm4237_vm4 = vcmp.gt.s32.totalorder %v881_v56, %v4232_v55  ;;  %s3830_s24 = smov 96   ;;  %s3831_s30 = smov 16  }
  0x97   : > { %813 = vmatprep.subr.mxu0 %v782_v20  ;;  %3474 = vmatprep.subr.mxu1 %v782_v20  ;;  %v771_v31 = vld [vmem:[%s4117_s15] sm:$0xff]  ;;  %s3826_s15 = smov 64   ;;  %v871_v54 = vld [vmem:[%s4122_s16 + $0x8] sm:$0xff]  ;;  %s3832_s22 = smov 80  }
  0x98   : > { %v4155_v2 = vld [vmem:[#allocation2] sm:$0xff]  ;;  %v4157_v3 = vld [vmem:[#allocation2 + $0x8] sm:$0xff]  ;;  %814 = vmatpush1.msra.mxu0 %v781_v21  ;;  %3482 = vmatpush1.msra.mxu1 %v781_v21  ;;  %s4627_s20 = scalar_lea.vmem [#allocation6], %s4094_s17  ;;  %s4629_s18 = scalar_lea.vmem [#allocation9], %s4094_s17 }
  0x99   : > { %v728_v4 = vsel %vm727_vm1, %v4155_v2, 0.0  ;;  %v731_v5 = vsel %vm727_vm1, %v4157_v3, 0.0  ;;  %815 = vmatprep.subr.mxu0 %v780_v22  ;;  %3475 = vmatprep.subr.mxu1 %v780_v22  ;;  %v3223_v40 = vld [vmem:[%s4623_s0] ss:$0 sm:$0xff]  ;;  %p3265_p11 = scmp.ne.s32.totalorder %s3970_s25, 1 }
  0x9a   : > { %729 = vadd.xlane.f32.xlu0 %v728_v4  ;;  %816 = vmatpush1.msra.mxu0 %v779_v23  ;;  %v3224_v42 = vld [vmem:[%s4624_s21] ss:$0 sm:$0xff]  ;;  %s4631_s3 = sld [smem:[#allocation26_spill]] (!%p3265_p11) }
  0x9b   : > { %3483 = vmatpush1.msra.mxu1 %v779_v23  ;;  %817 = vmatprep.subr.mxu0 %v778_v24  ;;  %s4633_s17 = sld [smem:[#allocation25_spill]] (!%p3265_p11) }
  0x9c   : > { %3476 = vmatprep.subr.mxu1 %v778_v24  ;;  %818 = vmatpush1.msra.mxu0 %v777_v25 }
  0x9d   : > { %3484 = vmatpush1.msra.mxu1 %v777_v25  ;;  %819 = vmatprep.subr.mxu0 %v776_v26 }
  0x9e   : > { %732 = vadd.xlane.f32.xlu0 %v731_v5  ;;  %3477 = vmatprep.subr.mxu1 %v776_v26 }
  0x9f   : > { %820 = vmatpush1.msra.mxu0 %v775_v27  ;;  %3485 = vmatpush1.msra.mxu1 %v775_v27 }
  0xa0   : > { %821 = vmatprep.subr.mxu0 %v774_v28  ;;  %857 = vmatprep.mubr.f32.mxu0 %v3824_v32 }
  0xa1   : > { %822 = vmatpush1.msra.mxu0 %v773_v29  ;;  %3478 = vmatprep.subr.mxu1 %v774_v28 }
  0xa2   : > { %823 = vmatprep.subr.mxu0 %v772_v30  ;;  %3486 = vmatpush1.msra.mxu1 %v773_v29 }
  0xa3   : > { %824 = vmatpush1.msra.mxu0 %v771_v31  ;;  %3479 = vmatprep.subr.mxu1 %v772_v30 }
  0xa4   : > { %3487 = vmatpush1.msra.mxu1 %v771_v31  ;;  %863 = vmatprep.mubr.f32.mxu1 %v3824_v32 }
  0xa5   : > { %3364 = vmatprep.subr.mxu1 %v3824_v32  ;;  %3389 = vmatprep.subr.mxu0 %v3824_v32 }
 0x123   : > { %v730_v6 = vpop.xlane.xlu0 %729 }
 0x124   : > { %v735_v7 = vmul.f32 0.015625, %v730_v6 }
 0x126   : > { %v4164_v8 = vsub.f32 %v4155_v2, %v735_v7 }
 0x127   : > { %v733_v9 = vpop.xlane.xlu0 %732 }
 0x128   : > { %v736_v10 = vmul.f32 0.015625, %v733_v9  ;;  %v739_v11 = vmul.f32 %v4164_v8, %v4164_v8 }
 0x12a   : > { %v4169_v12 = vsub.f32 %v4157_v3, %v736_v10  ;;  %v741_v13 = vsel %vm727_vm1, %v739_v11, 0.0 }
 0x12b   : > { %742 = vadd.xlane.f32.xlu1 %v741_v13 }
 0x12c   : > { %v740_v14 = vmul.f32 %v4169_v12, %v4169_v12 }
 0x12e   : > { %v744_v15 = vsel %vm727_vm1, %v740_v14, 0.0 }
 0x12f   : > { %745 = vadd.xlane.f32.xlu1 %v744_v15 }
 0x1b4   : > { %v743_v33 = vpop.xlane.xlu1 %742 }
 0x1b5   : > { %v747_v34 = vmul.f32 0.015625, %v743_v33 }
 0x1b7   : > { %v749_v35 = vadd.f32 1e-05, %v747_v34 }
 0x1b8   : > { %v746_v36 = vpop.xlane.xlu1 %745 }
 0x1b9   : > { %3584 = vrsqrt.f32 %v749_v35  ;;  %v748_v37 = vmul.f32 0.015625, %v746_v36 }
 0x1bb   : > { %v750_v38 = vadd.f32 1e-05, %v748_v37 }
 0x1bd   : > { %3586 = vrsqrt.f32 %v750_v38 }
 0x1c6   : > { %v3585_v39 = vpop.eup %3584 }
 0x1c7   : > { %v753_v41 = vmul.f32 %v3585_v39, %v4164_v8 }
 0x1c9   : > { %v761_v43 = vmul.f32 %v3223_v40, %v753_v41 }
 0x1ca   : > { %v3587_v44 = vpop.eup %3586 }
 0x1cb   : > { %v769_v45 = vadd.f32 %v3224_v42, %v761_v43  ;;  %v754_v46 = vmul.f32 %v3587_v44, %v4169_v12 }
 0x1cd   : > { %3225 = vmatmul.mubr.msk.f32.vlgmr.msra.gmra.mxu0 %vm727_vm1, %v769_v45  ;;  %v762_v47 = vmul.f32 %v3223_v40, %v754_v46 }
 0x1ce   : > { %3391 = vmatprep.mubr.msk.f32.mxu0 %vm3825_vm2, %v3824_v32 }
 0x1cf   : > { %v770_v48 = vadd.f32 %v3224_v42, %v762_v47 }
 0x1d1   : > { %3226 = vmatmul.mubr.msk.f32.vlgmr.msra.gmra.mxu1 %vm727_vm1, %v770_v48 }
 0x1d2   : > { %3366 = vmatprep.mubr.msk.f32.mxu1 %vm3825_vm2, %v3824_v32 }
 0x28d   : > { %v4210_v49 = vpop.f32.mrf.mxu0 }
 0x28e   : > { %884 = vrot.lane.b32.xlu0 %v4210_v49, %s3826_s15 }
 0x28f   : > { %v4224_v53 = vpop.f32.mrf.mxu0 }
 0x291   : > { %v4213_v50 = vpop.f32.mrf.mxu1 }
 0x292   : > { %962 = vrot.lane.b32.xlu1 %v4213_v50, %s3826_s15 }
 0x293   : > { %v4234_v57 = vpop.f32.mrf.mxu1 }
 0x300   : > { %v885_v51 = vpop.permute.xlu0 %884 }
 0x301   : > { %3365 = vmatpush3.xpose.msk.msra.mxu1 %vm886_vm3, %v885_v51 }
 0x302   : > { %3369 = vmatprep.subr.mxu1 %v3824_v32 }
 0x304   : > { %v963_v52 = vpop.permute.xlu1 %962  ;;  %3367 = vmatmul.mubr.msk.f32.vlgmr.msra.gmra.mxu1 %vm886_vm3, %v4210_v49 }
 0x305   : > { %3370 = vmatpush3.xpose.msk.msra.mxu1 %vm886_vm3, %v963_v52  ;;  %3371 = vmatprep.mubr.msk.f32.mxu1 %vm3825_vm2, %v3824_v32 }
 0x306   : > { %3374 = vmatprep.subr.mxu1 %v3824_v32 }
 0x308   : > { %3372 = vmatmul.mubr.msk.f32.vlgmr.msra.gmra.mxu1 %vm886_vm3, %v4213_v50 }
 0x309   : > { %3375 = vmatpush3.msra.mxu1 %v4224_v53  ;;  %3376 = vmatprep.mubr.msk.f32.mxu1 %vm3825_vm2, %v3824_v32 }
 0x30a   : > { %3379 = vmatprep.subr.mxu1 %v3824_v32 }
 0x3c4   : > { %v957_v59 = vpop.f32.mrf.mxu1 }
 0x3c5   : > { %v1040_v60 = vsel %vm4237_vm4, -1e+30, %v957_v59 }
 0x3c6   : > { %v1042_v61 = vmul.f32 0.25, %v1040_v60  ;;  %v3368_v62 = vpop.f32.mrf.mxu1 }
 0x3c8   : > { %v1034_v63 = vpop.f32.mrf.mxu1  ;;  %v1045_v0 = vsel %vm1044_vm5, %v1042_v61, -inf }
 0x3c9   : > { %v1041_v1 = vsel %vm4237_vm4, -1e+30, %v1034_v63  ;;  %1046 = vmax.xlane.f32.xlu1 %v1045_v0 }
 0x3ca   : > { %v1043_v4 = vmul.f32 0.25, %v1041_v1  ;;  %v3373_v5 = vpop.f32.mrf.mxu1  ;;  %v870_v1 = vld [vmem:[%s4122_s16] sm:$0xff] }
 0x3cc   : > { %v1048_v6 = vsel %vm1044_vm5, %v1043_v4, -inf }
 0x3cd   : > { %1049 = vmax.xlane.f32.xlu0 %v1048_v6 }
 0x3da   : > { %1293 = vrot.lane.b32.xlu1 %v4213_v50, %s3827_s27 }
 0x3de   : > { %1213 = vrot.lane.b32.xlu1 %v4210_v49, %s3828_s9 }
 0x452   : > { %v1047_v7 = vpop.xlane.xlu1 %1046 }
 0x453   : > { %v1051_v8 = vsub.f32 %v1042_v61, %v1047_v7 }
 0x455   : > { %v1053_v9 = vmul.f32 1.442695, %v1051_v8 }
 0x456   : > { %v1294_v10 = vpop.permute.xlu1 %1293  ;;  %v1050_v11 = vpop.xlane.xlu0 %1049 }
 0x457   : > { %3588 = vpow2.f32 %v1053_v9  ;;  %v1052_v12 = vsub.f32 %v1043_v4, %v1050_v11  ;;  %3390 = vmatpush3.xpose.msk.msra.mxu0 %vm886_vm3, %v1294_v10  ;;  %v873_v9 = vld [vmem:[%s4122_s16 + $0x18] sm:$0xff]  ;;  %v872_v10 = vld [vmem:[%s4122_s16 + $0x10] sm:$0xff] }
 0x458   : > { %3399 = vmatprep.subr.mxu0 %v3824_v32 }
 0x459   : > { %v1055_v13 = vmul.f32 1.442695, %v1052_v12 }
 0x45a   : > { %v1214_v18 = vpop.permute.xlu1 %1213 }
 0x45b   : > { %3590 = vpow2.f32 %v1055_v13 }
 0x464   : > { %v3589_v14 = vpop.eup %3588 }
 0x465   : > { %v1057_v15 = vsel %vm1044_vm5, %v3589_v14, 0.0 }
 0x466   : > { %1058 = vadd.xlane.f32.xlu0 %v1057_v15 }
 0x468   : > { %v3591_v16 = vpop.eup %3590 }
 0x469   : > { %v1060_v17 = vsel %vm1044_vm5, %v3591_v16, 0.0 }
 0x46a   : > { %1061 = vadd.xlane.f32.xlu1 %v1060_v17 }
 0x47b   : > { %1291 = vrot.lane.b32.xlu1 %v4213_v50, %s3828_s9 }
 0x47c   : > { %1215 = vrot.lane.b32.xlu0 %v4210_v49, %s3827_s27 }
 0x4ef   : > { %v1059_v19 = vpop.xlane.xlu0 %1058 }
 0x4f0   : > { %3592 = vrcp.f32 %v1059_v19 }
 0x4f3   : > { %v1062_v20 = vpop.xlane.xlu1 %1061  ;;  %v1216_v26 = vpop.permute.xlu0 %1215 }
 0x4f4   : > { %3594 = vrcp.f32 %v1062_v20 }
 0x4f7   : > { %v1292_v21 = vpop.permute.xlu1 %1291 }
 0x4f8   : > { %3392 = vmatmul.mubr.msk.f32.vlgmr.msra.gmra.mxu0 %vm886_vm3, %v1292_v21 }
 0x4f9   : > { %3401 = vmatprep.mubr.msk.f32.mxu0 %vm3825_vm2, %v3824_v32 }
 0x4fd   : > { %v3593_v22 = vpop.eup %3592 }
 0x4fe   : > { %v1065_v23 = vmul.f32 %v3593_v22, %v3589_v14 }
 0x500   : > { %3377 = vmatmul.mubr.msk.f32.vlgmr.msra.gmra.mxu1 %vm1044_vm5, %v1065_v23 }
 0x501   : > { %v3595_v24 = vpop.eup %3594  ;;  %3380 = vmatpush3.msra.mxu1 %v4234_v57  ;;  %3381 = vmatprep.mubr.msk.f32.mxu1 %vm3825_vm2, %v3824_v32 }
 0x502   : > { %3384 = vmatprep.subr.mxu1 %v3824_v32  ;;  %v1066_v25 = vmul.f32 %v3595_v24, %v3591_v16 }
 0x504   : > { %3382 = vmatmul.mubr.msk.f32.vlgmr.msra.gmra.mxu1 %vm1044_vm5, %v1066_v25 }
 0x505   : > { %3385 = vmatpush3.xpose.msk.msra.mxu1 %vm886_vm3, %v1216_v26  ;;  %3386 = vmatprep.mubr.msk.f32.mxu1 %vm3825_vm2, %v3824_v32 }
 0x506   : > { %3394 = vmatprep.subr.mxu1 %v3824_v32 }
 0x508   : > { %3387 = vmatmul.mubr.msk.f32.vlgmr.msra.gmra.mxu1 %vm886_vm3, %v1214_v18 }
 0x509   : > { %3396 = vmatprep.mubr.msk.f32.mxu1 %vm3825_vm2, %v3824_v32 }
 0x5b8   : > { %v1365_v27 = vpop.f32.mrf.mxu0 }
 0x5b9   : > { %v1370_v28 = vsel %vm4237_vm4, -1e+30, %v1365_v27 }
 0x5ba   : > { %v1372_v29 = vmul.f32 0.25, %v1370_v28  ;;  %v3393_v30 = vpop.f32.mrf.mxu0 }
 0x5bc   : > { %v1376_v31 = vsel %vm1044_vm5, %v1372_v29, -inf }
 0x5bd   : > { %1377 = vmax.xlane.f32.xlu1 %v1376_v31 }
 0x5c0   : > { %v1136_v33 = vpop.f32.mrf.mxu1 }
 0x5c2   : > { %v3378_v34 = vpop.f32.mrf.mxu1 }
 0x5c4   : > { %v1209_v35 = vpop.f32.mrf.mxu1 }
 0x5c6   : > { %v3383_v36 = vpop.f32.mrf.mxu1 }
 0x5c8   : > { %v1287_v37 = vpop.f32.mrf.mxu1 }
 0x5c9   : > { %v1369_v38 = vsel %vm4237_vm4, -1e+30, %v1287_v37 }
 0x5ca   : > { %v1371_v39 = vmul.f32 0.25, %v1369_v38  ;;  %v3388_v40 = vpop.f32.mrf.mxu1 }
 0x5cc   : > { %v1373_v41 = vsel %vm1044_vm5, %v1371_v39, -inf }
 0x5cd   : > { %1374 = vmax.xlane.f32.xlu0 %v1373_v41 }
 0x5ce   : > { %1473 = vrot.lane.b32.xlu1 %v4234_v57, %s3828_s9 }
 0x5d2   : > { %1713 = vrot.lane.b32.xlu1 %v4210_v49, %s3829_s10 }
 0x5d6   : > { %1791 = vrot.lane.b32.xlu1 %v4213_v50, %s3829_s10 }
 0x5da   : > { %1789 = vrot.lane.b32.xlu1 %v4213_v50, %s3830_s24 }
 0x646   : > { %v1378_v42 = vpop.xlane.xlu1 %1377 }
 0x647   : > { %v1380_v43 = vsub.f32 %v1372_v29, %v1378_v42 }
 0x649   : > { %v1383_v44 = vmul.f32 1.442695, %v1380_v43 }
 0x64a   : > { %v1474_v45 = vpop.permute.xlu1 %1473 }
 0x64b   : > { %3596 = vpow2.f32 %v1383_v44  ;;  %3400 = vmatpush3.msra.mxu0 %v1474_v45 }
 0x64c   : > { %3411 = vmatprep.subr.mxu0 %v871_v54 }
 0x64e   : > { %v1714_v61 = vpop.permute.xlu1 %1713 }
 0x652   : > { %v1792_v4 = vpop.permute.xlu1 %1791 }
 0x656   : > { %v1375_v46 = vpop.xlane.xlu0 %1374  ;;  %v1790_v6 = vpop.permute.xlu1 %1789 }
 0x657   : > { %v1379_v47 = vsub.f32 %v1371_v39, %v1375_v46 }
 0x658   : > { %v3597_v48 = vpop.eup %3596 }
 0x659   : > { %v1381_v51 = vmul.f32 1.442695, %v1379_v47  ;;  %v1388_v52 = vsel %vm1044_vm5, %v3597_v48, 0.0 }
 0x65a   : > { %1389 = vadd.xlane.f32.xlu0 %v1388_v52 }
 0x65b   : > { %3598 = vpow2.f32 %v1381_v51 }
 0x668   : > { %v3599_v56 = vpop.eup %3598 }
 0x669   : > { %v1385_v59 = vsel %vm1044_vm5, %v3599_v56, 0.0 }
 0x66a   : > { %1386 = vadd.xlane.f32.xlu0 %v1385_v59 }
 0x680   : > { %1396 = vrot.lane.b32.xlu0 %v4224_v53, %s3828_s9 }
 0x684   : > { %1711 = vrot.lane.b32.xlu0 %v4210_v49, %s3830_s24 }
 0x6e3   : > { %v1390_v60 = vpop.xlane.xlu0 %1389 }
 0x6e4   : > { %3600 = vrcp.f32 %v1390_v60 }
 0x6f1   : > { %v3601_v62 = vpop.eup %3600 }
 0x6f2   : > { %v1394_v63 = vmul.f32 %v3601_v62, %v3597_v48 }
 0x6f3   : > { %v1387_v0 = vpop.xlane.xlu0 %1386 }
 0x6f4   : > { %3602 = vrcp.f32 %v1387_v0  ;;  %3402 = vmatmul.mubr.msk.f32.vlgmr.msra.gmra.mxu0 %vm1044_vm5, %v1394_v63 }
 0x6f5   : > { %3412 = vmatpush3.msra.mxu0 %v871_v54  ;;  %3415 = vmatprep.mubr.msk.f32.mxu0 %vm886_vm3, %v1136_v33 }
 0x6f6   : > { %3413 = vmatprep.subr.mxu0 %v870_v1 }
 0x6f7   : > { %3414 = vmatpush3.msra.mxu0 %v870_v1  ;;  %v1397_v5 = vpop.permute.xlu0 %1396 }
 0x6f8   : > { %3423 = vmatprep.subr.mxu0 %v3824_v32  ;;  %3395 = vmatpush3.msra.mxu1 %v1397_v5 }
 0x6f9   : > { %3416 = vmatmul.mubr.msk.f32.vlgmr.msra.gmra.mxu0 %vm886_vm3, %v1209_v35  ;;  %3404 = vmatprep.subr.mxu1 %v873_v9 }
 0x6fa   : > { %3424 = vmatpush3.xpose.msk.msra.mxu0 %vm886_vm3, %v1792_v4  ;;  %3425 = vmatprep.mubr.msk.f32.mxu0 %vm3825_vm2, %v3824_v32 }
 0x6fb   : > { %3433 = vmatprep.subr.mxu0 %v3824_v32  ;;  %v1712_v22 = vpop.permute.xlu0 %1711 }
 0x6fd   : > { %3426 = vmatmul.mubr.msk.f32.vlgmr.msra.gmra.mxu0 %vm886_vm3, %v1790_v6 }
 0x6fe   : > { %3435 = vmatprep.mubr.msk.f32.mxu0 %vm3825_vm2, %v3824_v32 }
 0x701   : > { %v3603_v7 = vpop.eup %3602 }
 0x702   : > { %v1393_v8 = vmul.f32 %v3603_v7, %v3599_v56  ;;  %v875_v56 = vld [vmem:[%s4122_s16 + $0x28] sm:$0xff] }
 0x704   : > { %3397 = vmatmul.mubr.msk.f32.vlgmr.msra.gmra.mxu1 %vm1044_vm5, %v1393_v8 }
 0x705   : > { %3405 = vmatpush3.msra.mxu1 %v873_v9 }
 0x706   : > { %3406 = vmatprep.subr.mxu1 %v872_v10 }
 0x707   : > { %3407 = vmatpush3.msra.mxu1 %v872_v10 }
 0x708   : > { %3418 = vmatprep.subr.mxu1 %v3824_v32 }
 0x7b4   : > { %v1545_v11 = vpop.f32.mrf.mxu0 }
 0x7b6   : > { %v3403_v12 = vpop.f32.mrf.mxu0 }
 0x7b9   : > { %v4308_v13 = vpop.f32.mrf.mxu0 }
 0x7bb   : > { %v4310_v14 = vpop.f32.mrf.mxu0 }
 0x7bd   : > { %v1863_v15 = vpop.f32.mrf.mxu0 }
 0x7be   : > { %v1868_v16 = vsel %vm4237_vm4, -1e+30, %v1863_v15 }
 0x7bf   : > { %v1870_v17 = vmul.f32 0.25, %v1868_v16  ;;  %v3427_v18 = vpop.f32.mrf.mxu0 }
 0x7c1   : > { %v1874_v19 = vsel %vm1044_vm5, %v1870_v17, -inf }
 0x7c2   : > { %1875 = vmax.xlane.f32.xlu1 %v1874_v19 }
 0x7c4   : > { %v1468_v20 = vpop.f32.mrf.mxu1 }
 0x7c5   : > { %3408 = vmatprep.mubr.msk.f32.mxu1 %vm886_vm3, %v1468_v20 }
 0x7c6   : > { %v3398_v21 = vpop.f32.mrf.mxu1  ;;  %3409 = vmatmul.mubr.msk.f32.vlgmr.msra.gmra.mxu1 %vm886_vm3, %v1545_v11 }
 0x7c7   : > { %3419 = vmatpush3.xpose.msk.msra.mxu1 %vm886_vm3, %v1714_v61  ;;  %3420 = vmatprep.mubr.msk.f32.mxu1 %vm3825_vm2, %v3824_v32 }
 0x7c8   : > { %3428 = vmatprep.subr.mxu1 %v3824_v32 }
 0x7ca   : > { %3421 = vmatmul.mubr.msk.f32.vlgmr.msra.gmra.mxu1 %vm886_vm3, %v1712_v22 }
 0x7cb   : > { %3430 = vmatprep.mubr.msk.f32.mxu1 %vm3825_vm2, %v3824_v32 }
 0x7d3   : > { %1969 = vrot.lane.b32.xlu1 %v4234_v57, %s3830_s24 }
 0x7d7   : > { %2130 = vrot.lane.b32.xlu1 %v4210_v49, %s3831_s30 }
 0x7db   : > { %2208 = vrot.lane.b32.xlu1 %v4213_v50, %s3831_s30 }
 0x7df   : > { %2206 = vrot.lane.b32.xlu1 %v4213_v50, %s3832_s22 }
 0x84b   : > { %v1876_v23 = vpop.xlane.xlu1 %1875 }
 0x84c   : > { %v1878_v25 = vsub.f32 %v1870_v17, %v1876_v23 }
 0x84e   : > { %v1881_v26 = vmul.f32 1.442695, %v1878_v25 }
 0x84f   : > { %v1970_v24 = vpop.permute.xlu1 %1969 }
 0x850   : > { %3434 = vmatpush3.msra.mxu0 %v1970_v24  ;;  %3604 = vpow2.f32 %v1881_v26 }
 0x851   : > { %3445 = vmatprep.subr.mxu0 %v3824_v32 }
 0x853   : > { %v2131_v44 = vpop.permute.xlu1 %2130 }
 0x857   : > { %v2209_v0 = vpop.permute.xlu1 %2208 }
 0x85b   : > { %v2207_v5 = vpop.permute.xlu1 %2206 }
 0x85d   : > { %v3605_v34 = vpop.eup %3604 }
 0x85e   : > { %v1886_v35 = vsel %vm1044_vm5, %v3605_v34, 0.0 }
 0x886   : > { %v4333_v27 = vpop.f32.mrf.mxu1 }
 0x887   : > { %v1708_v11 = vadd.f32 %v4308_v13, %v4333_v27 }
 0x888   : > { %v4335_v28 = vpop.f32.mrf.mxu1 }
 0x889   : > { %v1703_v15 = vadd.f32 %v4310_v14, %v4335_v28 }
 0x88a   : > { %v1785_v29 = vpop.f32.mrf.mxu1 }
 0x88b   : > { %v1867_v30 = vsel %vm4237_vm4, -1e+30, %v1785_v29 }
 0x88c   : > { %v1869_v31 = vmul.f32 0.25, %v1867_v30  ;;  %v3422_v33 = vpop.f32.mrf.mxu1 }
 0x88e   : > { %v1871_v50 = vsel %vm1044_vm5, %v1869_v31, -inf }
 0x88f   : > { %1872 = vmax.xlane.f32.xlu0 %v1871_v50  ;;  %v877_v50 = vld [vmem:[%s4122_s16 + $0x38] sm:$0xff] }
 0x893   : > { %1887 = vadd.xlane.f32.xlu0 %v1886_v35 }
 0x918   : > { %v1873_v36 = vpop.xlane.xlu0 %1872 }
 0x919   : > { %v1877_v37 = vsub.f32 %v1869_v31, %v1873_v36 }
 0x91b   : > { %v1879_v38 = vmul.f32 1.442695, %v1877_v37 }
 0x91c   : > { %v1888_v39 = vpop.xlane.xlu0 %1887 }
 0x91d   : > { %3606 = vpow2.f32 %v1879_v38 }
 0x91e   : > { %3608 = vrcp.f32 %v1888_v39 }
 0x92a   : > { %v3607_v40 = vpop.eup %3606 }
 0x92b   : > { %v3609_v41 = vpop.eup %3608  ;;  %v1883_v42 = vsel %vm1044_vm5, %v3607_v40, 0.0 }
 0x92c   : > { %1884 = vadd.xlane.f32.xlu0 %v1883_v42  ;;  %v1892_v43 = vmul.f32 %v3609_v41, %v3605_v34  ;;  %v876_v34 = vld [vmem:[%s4122_s16 + $0x30] sm:$0xff] }
 0x92e   : > { %3436 = vmatmul.mubr.msk.f32.vlgmr.msra.gmra.mxu0 %vm1044_vm5, %v1892_v43 }
 0x92f   : > { %3446 = vmatpush3.xpose.msk.msra.mxu0 %vm886_vm3, %v2131_v44  ;;  %3447 = vmatprep.mubr.msk.f32.mxu0 %vm3825_vm2, %v3824_v32 }
 0x930   : > { %3455 = vmatprep.subr.mxu0 %v3824_v32 }
 0x942   : > { %1893 = vrot.lane.b32.xlu0 %v4224_v53, %s3830_s24 }
 0x946   : > { %2128 = vrot.lane.b32.xlu0 %v4210_v49, %s3832_s22  ;;  %v874_v49 = vld [vmem:[%s4122_s16 + $0x20] sm:$0xff]  ;;  %s4632_s16 = sld [smem:[#allocation24_spill]] (!%p3265_p11) }
 0x9b5   : > { %v1885_v45 = vpop.xlane.xlu0 %1884 }
 0x9b6   : > { %3610 = vrcp.f32 %v1885_v45 }
 0x9b9   : > { %v1894_v46 = vpop.permute.xlu0 %1893 }
 0x9ba   : > { %3429 = vmatpush3.msra.mxu1 %v1894_v46 }
 0x9bb   : > { %3438 = vmatprep.subr.mxu1 %v875_v56 }
 0x9bd   : > { %v2129_v47 = vpop.permute.xlu0 %2128 }
 0x9be   : > { %3448 = vmatmul.mubr.msk.f32.vlgmr.msra.gmra.mxu0 %vm886_vm3, %v2129_v47 }
 0x9bf   : > { %3457 = vmatprep.mubr.msk.f32.mxu0 %vm3825_vm2, %v3824_v32 }
 0x9c3   : > { %v3611_v48 = vpop.eup %3610 }
 0x9c4   : > { %v1891_v51 = vmul.f32 %v3611_v48, %v3607_v40  ;;  %v3259_v40 = vld [vmem:[%s4627_s20] ss:$0 sm:$0xff] }
 0x9c6   : > { %3431 = vmatmul.mubr.msk.f32.vlgmr.msra.gmra.mxu1 %vm1044_vm5, %v1891_v51 }
 0x9c7   : > { %3439 = vmatpush3.msra.mxu1 %v875_v56 }
 0x9c8   : > { %3440 = vmatprep.subr.mxu1 %v874_v49 }
 0x9c9   : > { %3441 = vmatpush3.msra.mxu1 %v874_v49 }
 0x9ca   : > { %3450 = vmatprep.subr.mxu1 %v3824_v32 }
 0x9ee   : > { %v2041_v52 = vpop.f32.mrf.mxu0 }
 0x9f0   : > { %v3437_v54 = vpop.f32.mrf.mxu0 }
 0xa7e   : > { %v2202_v59 = vpop.f32.mrf.mxu0 }
 0xa7f   : > { %v2284_v60 = vsel %vm4237_vm4, -1e+30, %v2202_v59 }
 0xa80   : > { %v2286_v61 = vmul.f32 0.25, %v2284_v60  ;;  %v3449_v62 = vpop.f32.mrf.mxu0 }
 0xa81   : > { %v2615_v62 = vld [vmem:[%s4135_s11 + $0x78] sm:$0xff] }
 0xa82   : > { %v2288_v63 = vsel %vm1044_vm5, %v2286_v61, -inf }
 0xa83   : > { %2289 = vmax.xlane.f32.xlu0 %v2288_v63  ;;  %v2614_v63 = vld [vmem:[%s4135_s11 + $0x70] sm:$0xff] }
 0xa86   : > { %v1965_v1 = vpop.f32.mrf.mxu1 }
 0xa87   : > { %3442 = vmatprep.mubr.msk.f32.mxu1 %vm886_vm3, %v1965_v1  ;;  %v2612_v1 = vld [vmem:[%s4135_s11 + $0x60] sm:$0xff] }
 0xa88   : > { %v3432_v4 = vpop.f32.mrf.mxu1  ;;  %3443 = vmatmul.mubr.msk.f32.vlgmr.msra.gmra.mxu1 %vm886_vm3, %v2041_v52 }
 0xa89   : > { %3451 = vmatpush3.xpose.msk.msra.mxu1 %vm886_vm3, %v2209_v0  ;;  %3452 = vmatprep.mubr.msk.f32.mxu1 %vm3825_vm2, %v3824_v32  ;;  %v2613_v0 = vld [vmem:[%s4135_s11 + $0x68] sm:$0xff]  ;;  %v2611_v4 = vld [vmem:[%s4135_s11 + $0x58] sm:$0xff] }
 0xa8a   : > { %3460 = vmatprep.subr.mxu1 %v3824_v32 }
 0xa8c   : > { %3453 = vmatmul.mubr.msk.f32.vlgmr.msra.gmra.mxu1 %vm886_vm3, %v2207_v5  ;;  %v2610_v5 = vld [vmem:[%s4135_s11 + $0x50] sm:$0xff] }
 0xa8d   : > { %3462 = vmatprep.mubr.msk.f32.mxu1 %vm3825_vm2, %v3824_v32 }
 0xb0c   : > { %v2290_v6 = vpop.xlane.xlu0 %2289 }
 0xb0d   : > { %v2294_v7 = vsub.f32 %v2286_v61, %v2290_v6  ;;  %v2609_v6 = vld [vmem:[%s4135_s11 + $0x48] sm:$0xff] }
 0xb0f   : > { %v2296_v8 = vmul.f32 1.442695, %v2294_v7  ;;  %v2608_v7 = vld [vmem:[%s4135_s11 + $0x40] sm:$0xff] }
 0xb11   : > { %3612 = vpow2.f32 %v2296_v8  ;;  %v2607_v8 = vld [vmem:[%s4135_s11 + $0x38] sm:$0xff] }
 0xb1e   : > { %v3613_v9 = vpop.eup %3612 }
 0xb1f   : > { %v2300_v10 = vsel %vm1044_vm5, %v3613_v9, 0.0 }
 0xb20   : > { %2301 = vadd.xlane.f32.xlu0 %v2300_v10  ;;  %v2605_v10 = vld [vmem:[%s4135_s11 + $0x28] sm:$0xff] }
 0xb48   : > { %v3444_v12 = vpop.f32.mrf.mxu1 }
 0xb49   : > { %v2127_v16 = vadd.f32 %v3444_v12, %v1708_v11  ;;  %v2604_v11 = vld [vmem:[%s4135_s11 + $0x20] sm:$0xff]  ;;  %v2603_v12 = vld [vmem:[%s4135_s11 + $0x18] sm:$0xff] }
 0xb4a   : > { %v2117_v17 = vpop.f32.mrf.mxu1 }
 0xb4b   : > { %v2126_v18 = vadd.f32 %v2117_v17, %v1703_v15  ;;  %v2602_v15 = vld [vmem:[%s4135_s11 + $0x10] sm:$0xff]  ;;  %v2600_v17 = vld [vmem:[%s4135_s11] sm:$0xff] }
 0xb4c   : > { %v2280_v19 = vpop.f32.mrf.mxu1 }
 0xb4d   : > { %v2285_v20 = vsel %vm4237_vm4, -1e+30, %v2280_v19 }
 0xb4e   : > { %v2287_v21 = vmul.f32 0.25, %v2285_v20  ;;  %v3454_v22 = vpop.f32.mrf.mxu1 }
 0xb50   : > { %v2291_v23 = vsel %vm1044_vm5, %v2287_v21, -inf }
 0xb51   : > { %2292 = vmax.xlane.f32.xlu1 %v2291_v23 }
 0xb62   : > { %2386 = vrot.lane.b32.xlu1 %v4234_v57, %s3832_s22 }
 0xba9   : > { %v2302_v58 = vpop.xlane.xlu0 %2301 }
 0xbda   : > { %v2293_v13 = vpop.xlane.xlu1 %2292 }
 0xbdb   : > { %v2295_v24 = vsub.f32 %v2287_v21, %v2293_v13 }
 0xbdd   : > { %v2298_v25 = vmul.f32 1.442695, %v2295_v24 }
 0xbde   : > { %v2387_v26 = vpop.permute.xlu1 %2386 }
 0xbdf   : > { %3614 = vpow2.f32 %v2298_v25  ;;  %3461 = vmatpush3.msra.mxu1 %v2387_v26 }
 0xbe0   : > { %3616 = vrcp.f32 %v2302_v58  ;;  %2650 = vmatprep.subr.mxu1 %v2615_v62  ;;  %v3261_v58 = vld [vmem:[%s4629_s18] ss:$0 sm:$0xff]  ;;  %v2744_v62 = vld [vmem:[%s4147_s28 + $0x8] sm:$0xff] }
 0xbec   : > { %v3615_v14 = vpop.eup %3614 }
 0xbed   : > { %v2303_v27 = vsel %vm1044_vm5, %v3615_v14, 0.0  ;;  %v3617_v29 = vpop.eup %3616 }
 0xbee   : > { %2304 = vadd.xlane.f32.xlu0 %v2303_v27  ;;  %v2308_v30 = vmul.f32 %v3617_v29, %v3613_v9  ;;  %v2606_v9 = vld [vmem:[%s4135_s11 + $0x30] sm:$0xff] }
 0xc04   : > { %2310 = vrot.lane.b32.xlu0 %v4224_v53, %s3832_s22 }
 0xc77   : > { %v2305_v28 = vpop.xlane.xlu0 %2304 }
 0xc78   : > { %3618 = vrcp.f32 %v2305_v28 }
 0xc7b   : > { %v2311_v57 = vpop.permute.xlu0 %2310 }
 0xc7c   : > { %3456 = vmatpush3.msra.mxu0 %v2311_v57 }
 0xc7d   : > { %3458 = vmatmul.mubr.msk.f32.vlgmr.msra.gmra.mxu0 %vm1044_vm5, %v2308_v30  ;;  %3465 = vmatprep.subr.mxu0 %v877_v50  ;;  %v2774_v30 = vld [vmem:[%s4147_s28 + $0xf8] sm:$0xff] }
 0xc7e   : > { %3466 = vmatpush3.msra.mxu0 %v877_v50  ;;  %v2757_v50 = vld [vmem:[%s4147_s28 + $0x70] sm:$0xff] }
 0xc7f   : > { %3467 = vmatprep.subr.mxu0 %v876_v34 }
 0xc80   : > { %3468 = vmatpush3.msra.mxu0 %v876_v34  ;;  %v2772_v34 = vld [vmem:[%s4147_s28 + $0xe8] sm:$0xff] }
 0xc81   : > { %3326 = vmatprep.subr.mxu0 %v2774_v30 }
 0xc85   : > { %v3619_v31 = vpop.eup %3618 }
 0xc86   : > { %v2309_v33 = vmul.f32 %v3619_v31, %v3615_v14  ;;  %v3260_v14 = vld [vmem:[%s4628_s26] ss:$0 sm:$0xff]  ;;  %v2758_v31 = vld [vmem:[%s4147_s28 + $0x78] sm:$0xff] }
 0xc88   : > { %3463 = vmatmul.mubr.msk.f32.vlgmr.msra.gmra.mxu1 %vm1044_vm5, %v2309_v33  ;;  %v2773_v33 = vld [vmem:[%s4147_s28 + $0xf0] sm:$0xff] }
 0xc89   : > { %2698 = vmatprep.mubr.f32.mxu1 %v3824_v32  ;;  %2651 = vmatpush1.msra.mxu1 %v2614_v63  ;;  %v2759_v63 = vld [vmem:[%s4147_s28 + $0x80] sm:$0xff] }
 0xc8a   : > { %2652 = vmatprep.subr.mxu1 %v2613_v0  ;;  %v2743_v0 = vld [vmem:[%s4147_s28] sm:$0xff] }
 0xc8b   : > { %2653 = vmatpush1.msra.mxu1 %v2612_v1  ;;  %v2620_v1 = vsub.s32 0, %v4232_v55 }
 0xc8c   : > { %2654 = vmatprep.subr.mxu1 %v2611_v4  ;;  %v2616_v4 = vld [vmem:[%s4141_s12] sm:$0x3] }
 0xc8d   : > { %2655 = vmatpush1.msra.mxu1 %v2610_v5  ;;  %v2624_v5 = vsub.s32 1, %v4232_v55 }
 0xc8e   : > { %2656 = vmatprep.subr.mxu1 %v2609_v6  ;;  %v2621_v6 = vrot.slane %v2616_v4, %v2620_v1 }
 0xc8f   : > { %2657 = vmatpush1.msra.mxu1 %v2608_v7  ;;  %v2625_v7 = vrot.slane %v2616_v4, %v2624_v5 }
 0xc90   : > { %2658 = vmatprep.subr.mxu1 %v2607_v8 }
 0xc91   : > { %2659 = vmatpush1.msra.mxu1 %v2606_v9 }
 0xc92   : > { %2660 = vmatprep.subr.mxu1 %v2605_v10 }
 0xc93   : > { %2661 = vmatpush1.msra.mxu1 %v2604_v11 }
 0xc94   : > { %2662 = vmatprep.subr.mxu1 %v2603_v12 }
 0xc95   : > { %2663 = vmatpush1.msra.mxu1 %v2602_v15 }
 0xd3d   : > { %v2382_v53 = vpop.f32.mrf.mxu0 }
 0xd3e   : > { %3469 = vmatprep.mubr.msk.f32.mxu0 %vm886_vm3, %v2382_v53  ;;  %v2771_v53 = vld [vmem:[%s4147_s28 + $0xe0] sm:$0xff] }
 0xd3f   : > { %v3459_v35 = vpop.f32.mrf.mxu0 }
 0xd40   : > { %v2755_v35 = vld [vmem:[%s4147_s28 + $0x60] sm:$0xff] }
 0xd48   : > { %v2458_v36 = vpop.f32.mrf.mxu1 }
 0xd49   : > { %3470 = vmatmul.mubr.msk.f32.vlgmr.msra.gmra.mxu0 %vm886_vm3, %v2458_v36  ;;  %v2770_v36 = vld [vmem:[%s4147_s28 + $0xd8] sm:$0xff] }
 0xd4a   : > { %v3464_v37 = vpop.f32.mrf.mxu1  ;;  %3327 = vmatpush3.msra.mxu0 %v2758_v31 }
 0xd4b   : > { %3328 = vmatprep.subr.mxu0 %v2773_v33  ;;  %v2754_v37 = vld [vmem:[%s4147_s28 + $0x58] sm:$0xff] }
 0xd4c   : > { %3329 = vmatpush3.msra.mxu0 %v2757_v50 }
 0xd4d   : > { %3330 = vmatprep.subr.mxu0 %v2772_v34 }
 0xe09   : > { %v3471_v38 = vpop.f32.mrf.mxu0 }
 0xe0a   : > { %v2544_v39 = vadd.f32 %v3471_v38, %v2127_v16  ;;  %v2601_v16 = vld [vmem:[%s4135_s11 + $0x8] sm:$0xff]  ;;  %v2769_v38 = vld [vmem:[%s4147_s28 + $0xd0] sm:$0xff] }
 0xe0b   : > { %v2534_v41 = vpop.f32.mrf.mxu0  ;;  %2664 = vmatprep.subr.mxu1 %v2601_v16 }
 0xe0c   : > { %v2546_v42 = vadd.f32 %v2544_v39, %v4157_v3  ;;  %v2543_v43 = vadd.f32 %v2534_v41, %v2126_v18  ;;  %2665 = vmatpush1.msra.mxu1 %v2600_v17  ;;  %v2753_v39 = vld [vmem:[%s4147_s28 + $0x50] sm:$0xff]  ;;  %v2752_v41 = vld [vmem:[%s4147_s28 + $0x48] sm:$0xff] }
 0xe0e   : > { %v4393_v44 = vadd.f32 %v3259_v40, %v2546_v42  ;;  %v2545_v45 = vadd.f32 %v2543_v43, %v4155_v2  ;;  %v2767_v42 = vld [vmem:[%s4147_s28 + $0xc0] sm:$0xff] }
 0xe0f   : > { %v2751_v43 = vld [vmem:[%s4147_s28 + $0x40] sm:$0xff] }
 0xe10   : > { %v4396_v46 = vadd.f32 %v3259_v40, %v2545_v45  ;;  %v2561_v47 = vsel %vm727_vm1, %v4393_v44, 0.0  ;;  %v2768_v40 = vld [vmem:[%s4147_s28 + $0xc8] sm:$0xff]  ;;  %v2766_v45 = vld [vmem:[%s4147_s28 + $0xb8] sm:$0xff] }
 0xe11   : > { %2562 = vadd.xlane.f32.xlu0 %v2561_v47  ;;  %v2750_v47 = vld [vmem:[%s4147_s28 + $0x38] sm:$0xff] }
 0xe12   : > { %v2558_v48 = vsel %vm727_vm1, %v4396_v46, 0.0 }
 0xe13   : > { %2559 = vadd.xlane.f32.xlu1 %v2558_v48  ;;  %v2765_v48 = vld [vmem:[%s4147_s28 + $0xb0] sm:$0xff] }
 0xe9a   : > { %v2563_v51 = vpop.xlane.xlu0 %2562 }
 0xe9b   : > { %v2565_v3 = vmul.f32 0.015625, %v2563_v51  ;;  %v2749_v51 = vld [vmem:[%s4147_s28 + $0x30] sm:$0xff] }
 0xe9c   : > { %v2560_v52 = vpop.xlane.xlu1 %2559 }
 0xe9d   : > { %v2567_v54 = vsub.f32 %v4393_v44, %v2565_v3  ;;  %v2564_v2 = vmul.f32 0.015625, %v2560_v52  ;;  %v2764_v3 = vld [vmem:[%s4147_s28 + $0xa8] sm:$0xff] }
 0xe9e   : > { %v2748_v52 = vld [vmem:[%s4147_s28 + $0x28] sm:$0xff] }
 0xe9f   : > { %v2566_v56 = vsub.f32 %v4396_v46, %v2564_v2  ;;  %v2569_v49 = vmul.f32 %v2567_v54, %v2567_v54  ;;  %v2747_v2 = vld [vmem:[%s4147_s28 + $0x20] sm:$0xff] }
 0xea1   : > { %v2573_v59 = vsel %vm727_vm1, %v2569_v49, 0.0  ;;  %v2568_v60 = vmul.f32 %v2566_v56, %v2566_v56  ;;  %v2746_v49 = vld [vmem:[%s4147_s28 + $0x18] sm:$0xff] }
 0xea2   : > { %2574 = vadd.xlane.f32.xlu1 %v2573_v59  ;;  %v2761_v59 = vld [vmem:[%s4147_s28 + $0x90] sm:$0xff] }
 0xea3   : > { %v2570_v61 = vsel %vm727_vm1, %v2568_v60, 0.0  ;;  %v2745_v60 = vld [vmem:[%s4147_s28 + $0x10] sm:$0xff] }
 0xea4   : > { %2571 = vadd.xlane.f32.xlu0 %v2570_v61  ;;  %v2760_v61 = vld [vmem:[%s4147_s28 + $0x88] sm:$0xff] }
 0xf2b   : > { %v2575_v18 = vpop.xlane.xlu1 %2574 }
 0xf2c   : > { %v2577_v19 = vmul.f32 0.015625, %v2575_v18 }
 0xf2d   : > { %v2572_v20 = vpop.xlane.xlu0 %2571 }
 0xf2e   : > { %v2579_v21 = vadd.f32 1e-05, %v2577_v19  ;;  %v2576_v22 = vmul.f32 0.015625, %v2572_v20 }
 0xf30   : > { %3620 = vrsqrt.f32 %v2579_v21  ;;  %v2578_v23 = vadd.f32 1e-05, %v2576_v22 }
 0xf32   : > { %3622 = vrsqrt.f32 %v2578_v23 }
 0xf3d   : > { %v3621_v13 = vpop.eup %3620 }
 0xf3e   : > { %v2583_v26 = vmul.f32 %v3621_v13, %v2567_v54  ;;  %v2763_v54 = vld [vmem:[%s4147_s28 + $0xa0] sm:$0xff] }
 0xf3f   : > { %v3623_v24 = vpop.eup %3622 }
 0xf40   : > { %v2582_v25 = vmul.f32 %v3623_v24, %v2566_v56  ;;  %v2591_v29 = vmul.f32 %v3260_v14, %v2583_v26  ;;  %v2762_v56 = vld [vmem:[%s4147_s28 + $0x98] sm:$0xff] }
 0xf42   : > { %v2590_v27 = vmul.f32 %v3260_v14, %v2582_v25  ;;  %v2599_v57 = vadd.f32 %v3261_v58, %v2591_v29 }
 0xf44   : > { %v2598_v28 = vadd.f32 %v3261_v58, %v2590_v27 }
 0xf46   : > { %3262 = vmatmul.mubr.msk.f32.vlgmr.msra.gmra.mxu1 %vm727_vm1, %v2598_v28 }
 0xf47   : > { %2704 = vmatprep.mubr.f32.mxu1 %v3824_v32  ;;  %v2756_v32 = vld [vmem:[%s4147_s28 + $0x68] sm:$0xff] }
 0xf48   : > { %3331 = vmatpush3.msra.mxu0 %v2756_v32 }
 0xf49   : > { %3332 = vmatprep.subr.mxu0 %v2771_v53 }
 0xf4a   : > { %3263 = vmatmul.mubr.msk.f32.gmra.mxu1 %vm727_vm1, %v2599_v57  ;;  %3333 = vmatpush3.msra.mxu0 %v2755_v35 }
 0xf4b   : > { %3334 = vmatprep.subr.mxu0 %v2770_v36 }
 0xf4c   : > { %3335 = vmatpush3.msra.mxu0 %v2754_v37 }
 0xf4d   : > { %3336 = vmatprep.subr.mxu0 %v2769_v38 }
 0xf4e   : > { %3337 = vmatpush3.msra.mxu0 %v2753_v39 }
 0xf4f   : > { %3338 = vmatprep.subr.mxu0 %v2768_v40 }
 0xf50   : > { %3339 = vmatpush3.msra.mxu0 %v2752_v41 }
 0xf51   : > { %3340 = vmatprep.subr.mxu0 %v2767_v42 }
 0xf52   : > { %3341 = vmatpush3.msra.mxu0 %v2751_v43 }
 0xf53   : > { %3342 = vmatprep.subr.mxu0 %v2766_v45  ;;  %v3264_v45 = vld [vmem:[%s713_s29] ss:$0 sm:$0xff] }
 0xf54   : > { %3343 = vmatpush3.msra.mxu0 %v2750_v47 }
 0xf55   : > { %3344 = vmatprep.subr.mxu0 %v2765_v48 }
 0xf56   : > { %3345 = vmatpush3.msra.mxu0 %v2749_v51 }
 0xf57   : > { %3346 = vmatprep.subr.mxu0 %v2764_v3 }
 0xf58   : > { %3347 = vmatpush3.msra.mxu0 %v2748_v52 }
 0xf59   : > { %3348 = vmatprep.subr.mxu0 %v2763_v54 }
 0xf5a   : > { %3349 = vmatpush3.msra.mxu0 %v2747_v2 }
 0xf5b   : > { %3350 = vmatprep.subr.mxu0 %v2762_v56 }
 0xf5c   : > { %3351 = vmatpush3.msra.mxu0 %v2746_v49 }
 0xf5d   : > { %3352 = vmatprep.subr.mxu0 %v2761_v59 }
 0xf5e   : > { %3353 = vmatpush3.msra.mxu0 %v2745_v60 }
 0xf5f   : > { %3354 = vmatprep.subr.mxu0 %v2760_v61 }
 0xf60   : > { %3355 = vmatpush3.msra.mxu0 %v2744_v62 }
 0xf61   : > { %3356 = vmatprep.subr.mxu0 %v2759_v63 }
 0xf62   : > { %3357 = vmatpush3.msra.mxu0 %v2743_v0 }
0x1006   : > { %v2700_v8 = vpop.f32.mrf.mxu1 }
0x1007   : > { %v2701_v9 = vadd.f32 %v2700_v8, %v2621_v6 }
0x1008   : > { %v2702_v10 = vpop.f32.mrf.mxu1 }
0x1009   : > { %v2711_v11 = vmul.f32 %v2701_v9, %v2701_v9  ;;  %v2703_v12 = vadd.f32 %v2702_v10, %v2625_v7  ;;  %v2727_v53 = vmul.f32 0.5, %v2701_v9 }
0x100a   : > { %v2706_v15 = vpop.f32.mrf.mxu1 }
0x100b   : > { %v2715_v16 = vmul.f32 %v2711_v11, %v2701_v9  ;;  %v2712_v17 = vmul.f32 %v2703_v12, %v2703_v12  ;;  %v2707_v18 = vadd.f32 %v2706_v15, %v2621_v6  ;;  %v2728_v34 = vmul.f32 0.5, %v2703_v12 }
0x100c   : > { %v2708_v19 = vpop.f32.mrf.mxu1 }
0x100d   : > { %v2719_v20 = vmul.f32 0.044715, %v2715_v16  ;;  %v2716_v21 = vmul.f32 %v2712_v17, %v2703_v12  ;;  %v2713_v22 = vmul.f32 %v2707_v18, %v2707_v18  ;;  %v2709_v23 = vadd.f32 %v2708_v19, %v2625_v7 }
0x100e   : > { %v2729_v40 = vmul.f32 0.5, %v2707_v18 }
0x100f   : > { %v2723_v13 = vadd.f32 %v2719_v20, %v2701_v9  ;;  %v2720_v24 = vmul.f32 0.044715, %v2716_v21  ;;  %v2717_v25 = vmul.f32 %v2713_v22, %v2707_v18  ;;  %v2714_v55 = vmul.f32 %v2709_v23, %v2709_v23 }
0x1010   : > { %v2730_v38 = vmul.f32 0.5, %v2709_v23 }
0x1011   : > { %v2731_v26 = vmul.f32 0.7978846, %v2723_v13  ;;  %v2724_v14 = vadd.f32 %v2720_v24, %v2703_v12  ;;  %v2721_v27 = vmul.f32 0.044715, %v2717_v25  ;;  %v2718_v58 = vmul.f32 %v2714_v55, %v2709_v23 }
0x1013   : > { %v2732_v28 = vmul.f32 0.7978846, %v2724_v14  ;;  %v2725_v29 = vadd.f32 %v2721_v27, %v2707_v18  ;;  %v2722_v57 = vmul.f32 0.044715, %v2718_v58  ;;  %3624 = vtanh.f32 %v2731_v26 }
0x1015   : > { %3626 = vtanh.f32 %v2732_v28  ;;  %v2733_v30 = vmul.f32 0.7978846, %v2725_v29  ;;  %v2726_v31 = vadd.f32 %v2722_v57, %v2709_v23 }
0x1017   : > { %v2734_v33 = vmul.f32 0.7978846, %v2726_v31  ;;  %3628 = vtanh.f32 %v2733_v30 }
0x1019   : > { %3630 = vtanh.f32 %v2734_v33 }
0x1020   : > { %v3625_v50 = vpop.eup %3624 }
0x1021   : > { %v2739_v36 = vmul.f32 %v3625_v50, %v2727_v53 }
0x1022   : > { %v3627_v32 = vpop.eup %3626 }
0x1023   : > { %v2740_v35 = vmul.f32 %v3627_v32, %v2728_v34 }
0x1024   : > { %v3629_v37 = vpop.eup %3628 }
0x1025   : > { %2846 = vmatprep.mubr.f32.mxu0 %v2740_v35  ;;  %v2741_v42 = vmul.f32 %v3629_v37, %v2729_v40 }
0x1026   : > { %v3631_v39 = vpop.eup %3630  ;;  %2847 = vmatmul.mubr.f32.vlgmr.msra.gmra.mxu0 %v2739_v36 }
0x1027   : > { %v2742_v41 = vmul.f32 %v3631_v39, %v2730_v38 }
0x1029   : > { %2851 = vmatprep.mubr.f32.mxu0 %v2742_v41 }
0x102a   : > { %2852 = vmatmul.mubr.f32.gmra.mxu0 %v2741_v42 }
0x10e6   : > { %v3358_v43 = vpop.f32.mrf.mxu0 }
0x10e8   : > { %v3359_v47 = vpop.f32.mrf.mxu0 }
0x10e9   : > { %v3360_v48 = vadd.f32 %v3359_v47, %v3358_v43 }
0x10ea   : > { %v3361_v51 = vpop.f32.mrf.mxu0 }
0x10eb   : > { %v2849_v3 = vadd.f32 %v3360_v48, %v3264_v45 }
0x10ec   : > { %v3362_v52 = vpop.f32.mrf.mxu0 }
0x10ed   : > { %v2857_v54 = vadd.f32 %v2849_v3, %v4396_v46  ;;  %v3363_v2 = vadd.f32 %v3362_v52, %v3361_v51 }
0x10ef   : > { %2859 = vst.msk [vmem:[#allocation2] sm:$0xff] %vm727_vm1, %v2857_v54  ;;  %v2854_v56 = vadd.f32 %v3363_v2, %v3264_v45  ;;  %2864 = sbr.rel (%p3265_p11) target bundleno = 4848 (0x12f0), region = 104 }
0x10f1   : > { %v2858_v49 = vadd.f32 %v2854_v56, %v4393_v44 }
0x10f3   : > { %2860 = vst.msk [vmem:[#allocation2 + $0x8] sm:$0xff] %vm727_vm1, %v2858_v49 }
0x10f4   : > { %v2867_v59 = vsel %vm727_vm1, %v2857_v54, 0.0  ;;  %v2870_v60 = vsel %vm727_vm1, %v2858_v49, 0.0  ;;  %v2924_v7 = vld [vmem:[%s4631_s3 + $0x78] sm:$0xff]  ;;  %v2923_v8 = vld [vmem:[%s4631_s3 + $0x70] sm:$0xff]  ;;  %v2922_v9 = vld [vmem:[%s4631_s3 + $0x68] sm:$0xff]  ;;  %v3833_v24 = vmov 0.0  }
0x10f5   : > { %2868 = vadd.xlane.f32.xlu0 %v2867_v59  ;;  %2947 = vmatprep.subr.mxu0 %v2924_v7  ;;  %v2921_v10 = vld [vmem:[%s4631_s3 + $0x60] sm:$0xff]  ;;  %v2920_v11 = vld [vmem:[%s4631_s3 + $0x58] sm:$0xff]  ;;  %v2919_v12 = vld [vmem:[%s4631_s3 + $0x50] sm:$0xff] }
0x10f6   : > { %3488 = vmatprep.subr.mxu1 %v2924_v7  ;;  %2948 = vmatpush1.msra.mxu0 %v2923_v8  ;;  %v2918_v15 = vld [vmem:[%s4631_s3 + $0x48] sm:$0xff]  ;;  %v2917_v16 = vld [vmem:[%s4631_s3 + $0x40] sm:$0xff]  ;;  %v2916_v17 = vld [vmem:[%s4631_s3 + $0x38] sm:$0xff] }
0x10f7   : > { %3496 = vmatpush1.msra.mxu1 %v2923_v8  ;;  %2949 = vmatprep.subr.mxu0 %v2922_v9  ;;  %v2915_v18 = vld [vmem:[%s4631_s3 + $0x30] sm:$0xff]  ;;  %v2914_v19 = vld [vmem:[%s4631_s3 + $0x28] sm:$0xff]  ;;  %v2913_v20 = vld [vmem:[%s4631_s3 + $0x20] sm:$0xff] }
0x10f8   : > { %3489 = vmatprep.subr.mxu1 %v2922_v9  ;;  %2950 = vmatpush1.msra.mxu0 %v2921_v10  ;;  %v2912_v21 = vld [vmem:[%s4631_s3 + $0x18] sm:$0xff]  ;;  %v2911_v22 = vld [vmem:[%s4631_s3 + $0x10] sm:$0xff]  ;;  %v2910_v23 = vld [vmem:[%s4631_s3 + $0x8] sm:$0xff] }
0x10f9   : > { %2871 = vadd.xlane.f32.xlu0 %v2870_v60  ;;  %3497 = vmatpush1.msra.mxu1 %v2921_v10  ;;  %v2909_v13 = vld [vmem:[%s4631_s3] sm:$0xff] }
0x10fa   : > { %2951 = vmatprep.subr.mxu0 %v2920_v11  ;;  %3490 = vmatprep.subr.mxu1 %v2920_v11  ;;  %v3266_v29 = vld [vmem:[%s4632_s16] ss:$0 sm:$0xff] }
0x10fb   : > { %2952 = vmatpush1.msra.mxu0 %v2919_v12  ;;  %3498 = vmatpush1.msra.mxu1 %v2919_v12  ;;  %v3267_v30 = vld [vmem:[%s4633_s17] ss:$0 sm:$0xff] }
0x10fc   : > { %2953 = vmatprep.subr.mxu0 %v2918_v15  ;;  %3491 = vmatprep.subr.mxu1 %v2918_v15 }
0x10fd   : > { %2954 = vmatpush1.msra.mxu0 %v2917_v16  ;;  %3499 = vmatpush1.msra.mxu1 %v2917_v16 }
0x10fe   : > { %2955 = vmatprep.subr.mxu0 %v2916_v17  ;;  %3492 = vmatprep.subr.mxu1 %v2916_v17 }
0x10ff   : > { %2956 = vmatpush1.msra.mxu0 %v2915_v18  ;;  %3500 = vmatpush1.msra.mxu1 %v2915_v18 }
0x1100   : > { %2957 = vmatprep.subr.mxu0 %v2914_v19  ;;  %3493 = vmatprep.subr.mxu1 %v2914_v19 }
0x1101   : > { %2958 = vmatpush1.msra.mxu0 %v2913_v20  ;;  %3501 = vmatpush1.msra.mxu1 %v2913_v20 }
0x1102   : > { %2959 = vmatprep.subr.mxu0 %v2912_v21  ;;  %2995 = vmatprep.mubr.f32.mxu0 %v3833_v24 }
0x1103   : > { %2960 = vmatpush1.msra.mxu0 %v2911_v22  ;;  %3494 = vmatprep.subr.mxu1 %v2912_v21 }
0x1104   : > { %2961 = vmatprep.subr.mxu0 %v2910_v23  ;;  %3502 = vmatpush1.msra.mxu1 %v2911_v22 }
0x1105   : > { %2962 = vmatpush1.msra.mxu0 %v2909_v13  ;;  %3495 = vmatprep.subr.mxu1 %v2910_v23 }
0x1106   : > { %3503 = vmatpush1.msra.mxu1 %v2909_v13  ;;  %3001 = vmatprep.mubr.f32.mxu1 %v3833_v24 }
0x117e   : > { %v2869_v61 = vpop.xlane.xlu0 %2868 }
0x117f   : > { %v2873_v62 = vmul.f32 0.015625, %v2869_v61 }
0x1181   : > { %v4479_v46 = vsub.f32 %v2857_v54, %v2873_v62 }
0x1182   : > { %v2872_v63 = vpop.xlane.xlu0 %2871 }
0x1183   : > { %v2874_v0 = vmul.f32 0.015625, %v2872_v63  ;;  %v2877_v44 = vmul.f32 %v4479_v46, %v4479_v46 }
0x1185   : > { %v4483_v1 = vsub.f32 %v2858_v49, %v2874_v0  ;;  %v2879_v4 = vsel %vm727_vm1, %v2877_v44, 0.0 }
0x1186   : > { %2880 = vadd.xlane.f32.xlu1 %v2879_v4 }
0x1187   : > { %v2878_v5 = vmul.f32 %v4483_v1, %v4483_v1 }
0x1189   : > { %v2882_v6 = vsel %vm727_vm1, %v2878_v5, 0.0 }
0x118a   : > { %2883 = vadd.xlane.f32.xlu1 %v2882_v6 }
0x120f   : > { %v2881_v25 = vpop.xlane.xlu1 %2880 }
0x1210   : > { %v2885_v55 = vmul.f32 0.015625, %v2881_v25 }
0x1212   : > { %v2887_v26 = vadd.f32 1e-05, %v2885_v55 }
0x1213   : > { %v2884_v14 = vpop.xlane.xlu1 %2883 }
0x1214   : > { %3632 = vrsqrt.f32 %v2887_v26  ;;  %v2886_v27 = vmul.f32 0.015625, %v2884_v14 }
0x1216   : > { %v2888_v58 = vadd.f32 1e-05, %v2886_v27 }
0x1218   : > { %3634 = vrsqrt.f32 %v2888_v58 }
0x1221   : > { %v3633_v28 = vpop.eup %3632 }
0x1222   : > { %v2891_v57 = vmul.f32 %v3633_v28, %v4479_v46 }
0x1224   : > { %v2899_v31 = vmul.f32 %v3266_v29, %v2891_v57 }
0x1225   : > { %v3635_v33 = vpop.eup %3634 }
0x1226   : > { %v2907_v50 = vadd.f32 %v3267_v30, %v2899_v31  ;;  %v2892_v34 = vmul.f32 %v3635_v33, %v4483_v1 }
0x1228   : > { %3268 = vmatmul.mubr.msk.f32.vlgmr.msra.gmra.mxu0 %vm727_vm1, %v2907_v50  ;;  %v2900_v32 = vmul.f32 %v3266_v29, %v2892_v34 }
0x122a   : > { %v2908_v53 = vadd.f32 %v3267_v30, %v2900_v32 }
0x122c   : > { %3269 = vmatmul.mubr.msk.f32.vlgmr.msra.gmra.mxu1 %vm727_vm1, %v2908_v53 }
0x12e8   : > { %v2997_v35 = vpop.f32.mrf.mxu0 }
0x12e9   : > { %3008 = vst [vmem:[#allocation11] sm:$0xff] %v2997_v35 }
0x12ea   : > { %v2999_v36 = vpop.f32.mrf.mxu0 }
0x12eb   : > { %3009 = vst [vmem:[#allocation11 + $0x8] sm:$0xff] %v2999_v36 }
0x12ec   : > { %v3003_v37 = vpop.f32.mrf.mxu1 }
0x12ed   : > { %3010 = vst [vmem:[#allocation11 + $0x10] sm:$0xff] %v3003_v37 }
0x12ee   : > { %v3005_v38 = vpop.f32.mrf.mxu1 }
0x12ef   : > { %3011 = vst [vmem:[#allocation11 + $0x18] sm:$0xff] %v3005_v38 }
0x12f0 PF: > { %p3535_p12 = scmp.eq.s32.totalorder %s3970_s25, 1  ;;  %s3834_s12 = smov [#allocation11]  }
0x12f1   : > { %s3018_s28 = sshll.u32 %s3834_s12, 4  ;;  %s3019_s28 = int_to_ptr.vmem [resolvable:$true] %s3018_s28 }
0x12f2   : > { %s3746_s14 = scalar_lea.vmem %s3019_s28, 512  ;;  %p3753_p6 = scmp.lt.s32.totalorder %s3019_s28, %s3019_s28 }
0x12f3   : > { %p3747_p3 = scmp.ne.s32.totalorder %s3019_s28, %s3746_s14  ;;  %p3754_p10 = scmp.lt.s32.totalorder %s3746_s14, %s3746_s14 }
0x12f5   : > { %p3748_p2 = pnand %p3747_p3, %p3535_p12  ;;  %p3755_p13 = por %p3754_p10, %p3753_p6 }
0x12f7   : > { %p3749_p4 = pneg %p3748_p2 }
0x12f9   : > { %p3756_p1 = pnand %p3755_p13, %p3749_p4 }
0x12fb   : > { %3759 = shalt.err (!%p3756_p1)
}
0x12fc   : > { %s3835_s29 = smov 256   ;;  %s4634_s13 = sld [smem:[#allocation27_spill]] }
0x1302   : > { %3515 = dma.vmem_to_hbm [thread:$0]  (%p3535_p12), %s3019_s28, 512, %s4634_s13, [#allocation5], %s3835_s29, %s3835_s29, %s3831_s30  }
0x1303   : > { %3799 = dma.done.wait (%p3535_p12), [#allocation5], 512  }
0x1304   : > { %3801 = vsyncadd (%p3535_p12), [#allocation5], 4294966784 }
0x1305 PF: > { %s4635_s21 = sld [smem:[#allocation17_spill]]  ;;  %s4638_s18 = smov %s3808_s19 }
0x1306   : > { %s4636_s15 = sld [smem:[#allocation16_spill]] }
0x1307   : > { %s4637_s20 = sld [smem:[#allocation18_spill]] }
0x130b   : > { %p30_p8 = scmp.ge.s32.totalorder %s4635_s21, 4  }
0x130c   : > { %s4639_s19 = smov %s4636_s15 }
0x130d   :  { %32 = sbr.rel (!%p30_p8) target bundleno = 17 (0x11), region = 178 }
0x1312   :  { %3034 = vsyncpa [#allocation4], 1 }
0x1313   :  { %3036 = vsyncpa [#allocation4 + $0x1], 1 }
0x1314   :  { %3037 = vsyncpa [#allocation7], 1 }
0x1315   :  { %3039 = vsyncpa [#allocation7 + $0x1], 1 }
0x1316   :  { %3040 = vsyncpa [#allocation10], 1 }
0x1317   :  { %3042 = vsyncpa [#allocation10 + $0x1], 1 }
0x1318   :  { %3043 = vsyncpa [#allocation5], 1 }
0x1319   :  { %3045 = vsyncpa [#allocation5 + $0x1], 1 }

</bundles_post_ra>
